<compile_context>
chip_gen: v7x
topology: tpu7x:2x2x1
jax: 0.10.0
libtpu: 0.0.40
codegen_flags: <defaults>
</compile_context>

<pallas_src>
import jax
import jax.numpy as jnp
import numpy as np
from jax.experimental import pallas as pl
from jax.experimental.pallas import tpu as pltpu

NUM_FEATURES = 32     # num_features
EMBED = 48            # embedding_size
HIDDEN = 64           # hidden_size
NUM_OBJECTS = 4
NUM_NEIGHBORS = 8

# Row offsets inside the packed GRU weight matrix (all multiples of 8 -> clean
# sublane-aligned static slices).
_K1 = HIDDEN + NUM_FEATURES + EMBED      # 144: FC1(+W_e)-folded fusionGRU input block
_K2 = NUM_FEATURES + HIDDEN              # 96 : FC2-folded languageGRU input block
_OFF_I1 = 0
_OFF_H1 = _K1                            # 144
_OFF_I2 = _K1 + HIDDEN                   # 208
_OFF_H2 = _K1 + HIDDEN + _K2             # 304
_GRU_ROWS = _OFF_H2 + HIDDEN             # 368


# ---------------------------------------------------------------------------
# Pallas kernel
# ---------------------------------------------------------------------------
def _gru_combine(gi, gh, h, H):
    """PyTorch nn.GRU cell combine (gate order r, z, n) from precomputed gates."""
    r = jax.nn.sigmoid(gi[:, 0:H] + gh[:, 0:H])
    z = jax.nn.sigmoid(gi[:, H:2 * H] + gh[:, H:2 * H])
    n = jnp.tanh(gi[:, 2 * H:3 * H] + r * gh[:, 2 * H:3 * H])
    return (1.0 - z) * n + z * h


def cap_kernel(v_ref, e_ref, wg_ref, bg_ref, watt_ref, w3_ref, b3_ref, out_ref):
    F, H, Emb = NUM_FEATURES, HIDDEN, EMBED
    n_obj = v_ref.shape[0]

    # Recurrent state lives in registers (values), not VMEM scratch.
    h1 = jnp.zeros((1, H), jnp.float32)
    h2 = jnp.zeros((1, H), jnp.float32)
    tok = jnp.zeros((1, Emb), jnp.float32)

    toks = []
    # Fully unrolled static loop over objects (equivalent to
    # lax.fori_loop(..., unroll=True) but gives static slice indices).
    for i in range(n_obj):
        v_i = v_ref[pl.ds(i, 1), :]          # (1, F)   object_feature
        e_i = e_ref[i]                       # (Nnb, F) E[i]
        v_r = v_i + e_i                      # (Nnb, F) V_r

        # fusionGRU with W_e/FC1 folded into the input-gate weight.
        xin1 = jnp.concatenate([h2, v_i, tok], axis=1)                  # (1, 144)
        gi1 = (jnp.dot(xin1, wg_ref[pl.ds(_OFF_I1, _K1), :],
                       preferred_element_type=jnp.float32)
               + bg_ref[pl.ds(0, 1), :])                                # (1, 3H)
        gh1 = (jnp.dot(h1, wg_ref[pl.ds(_OFF_H1, H), :],
                       preferred_element_type=jnp.float32)
               + bg_ref[pl.ds(1, 1), :])                                # (1, 3H)
        h1 = _gru_combine(gi1, gh1, h1, H)

        # Attention: W_a folded into W_v / W_h -> two thin dots + softmax.
        scores = (jnp.dot(v_r, watt_ref[pl.ds(0, F), :],
                          preferred_element_type=jnp.float32)
                  + jnp.dot(h1, watt_ref[pl.ds(F, H), :],
                            preferred_element_type=jnp.float32))        # (Nnb, 1)
        scores = scores - jnp.max(scores, axis=0, keepdims=True)
        p = jnp.exp(scores)
        att = p * pl.reciprocal(jnp.sum(p, axis=0, keepdims=True), approx=True)
        ctx = jnp.sum(v_r * att, axis=0, keepdims=True)                 # (1, F)

        # languageGRU with FC2 folded into the input-gate weight.
        xin2 = jnp.concatenate([ctx, h1], axis=1)                       # (1, 96)
        gi2 = (jnp.dot(xin2, wg_ref[pl.ds(_OFF_I2, _K2), :],
                       preferred_element_type=jnp.float32)
               + bg_ref[pl.ds(2, 1), :])                                # (1, 3H)
        gh2 = (jnp.dot(h2, wg_ref[pl.ds(_OFF_H2, H), :],
                       preferred_element_type=jnp.float32)
               + bg_ref[pl.ds(3, 1), :])                                # (1, 3H)
        h2 = _gru_combine(gi2, gh2, h2, H)

        # token = FC3(hidden2)
        tok = (jnp.dot(h2, w3_ref[...], preferred_element_type=jnp.float32)
               + b3_ref[...])                                           # (1, Emb)
        toks.append(tok)

    # Single bulk store of all token rows.
    out_ref[...] = jnp.concatenate(toks, axis=0)


# ---------------------------------------------------------------------------
# Parameter construction (deterministic, PyTorch [out, in] layout)
# ---------------------------------------------------------------------------
def init_params(key, F=NUM_FEATURES, E=EMBED, H=HIDDEN):
    ks = jax.random.split(key, 18)

    def mat(k, shape, scale=0.1):
        return (scale * jax.random.normal(k, shape)).astype(jnp.float32)

    return {
        "W_e":    mat(ks[0],  (E, E)),
        "FC1_W":  mat(ks[1],  (H, H + F + E)),
        "FC1_b":  mat(ks[2],  (H,)),
        "g1_Wih": mat(ks[3],  (3 * H, H)),
        "g1_Whh": mat(ks[4],  (3 * H, H)),
        "g1_bih": mat(ks[5],  (3 * H,)),
        "g1_bhh": mat(ks[6],  (3 * H,)),
        "W_v":    mat(ks[7],  (F, F)),
        "W_h":    mat(ks[8],  (F, H)),
        "W_a":    mat(ks[9],  (1, F)),
        "FC2_W":  mat(ks[10], (H, H + F)),
        "FC2_b":  mat(ks[11], (H,)),
        "g2_Wih": mat(ks[12], (3 * H, H)),
        "g2_Whh": mat(ks[13], (3 * H, H)),
        "g2_bih": mat(ks[14], (3 * H,)),
        "g2_bhh": mat(ks[15], (3 * H,)),
        "FC3_W":  mat(ks[16], (E, H)),
        "FC3_b":  mat(ks[17], (E,)),
    }


def pack_kernel_params(p, F=NUM_FEATURES, E=EMBED, H=HIDDEN):
    """Fold/compose linear layers (exact) and pack into 5 dense operands."""
    # ---- fusionGRU: fold W_e into FC1's embedding block, then FC1 into Wih.
    w1t = p["FC1_W"].T                                     # (H+F+E, H), rows [h2|v|x_t]
    w1f = jnp.concatenate([w1t[:H + F], p["W_e"].T @ w1t[H + F:]], axis=0)
    wih1t = p["g1_Wih"].T                                  # (H, 3H)
    wi1 = w1f @ wih1t                                      # (144, 3H)
    bi1 = p["FC1_b"][None, :] @ wih1t + p["g1_bih"][None, :]
    whh1t = p["g1_Whh"].T                                  # (H, 3H)
    bhh1 = p["g1_bhh"][None, :]

    # ---- languageGRU: fold FC2 into Wih.
    w2t = p["FC2_W"].T                                     # (F+H, H), rows [ctx|h1]
    wih2t = p["g2_Wih"].T
    wi2 = w2t @ wih2t                                      # (96, 3H)
    bi2 = p["FC2_b"][None, :] @ wih2t + p["g2_bih"][None, :]
    whh2t = p["g2_Whh"].T
    bhh2 = p["g2_bhh"][None, :]

    w_gru = jnp.concatenate([wi1, whh1t, wi2, whh2t], axis=0)   # (368, 3H)
    b_gru = jnp.concatenate([bi1, bhh1, bi2, bhh2], axis=0)     # (4, 3H)

    # ---- attention: fold W_a into W_v / W_h.
    wv_a = p["W_v"].T @ p["W_a"].T                         # (F, 1)
    wh_a = p["W_h"].T @ p["W_a"].T                         # (H, 1)
    w_att = jnp.concatenate([wv_a, wh_a], axis=0)          # (F+H, 1)

    w3t = p["FC3_W"].T                                     # (H, E)
    b3 = p["FC3_b"][None, :]                               # (1, E)
    return (w_gru, b_gru, w_att, w3t, b3)


# ---------------------------------------------------------------------------
# Wrapper
# ---------------------------------------------------------------------------
def attention_cap_forward(V, E_feats, params):
    n_obj = V.shape[0]
    operands = (V, E_feats) + pack_kernel_params(params)

    def full_spec(shape):
        nd = len(shape)
        return pl.BlockSpec(shape, lambda i, _nd=nd: (0,) * _nd)

    fn = pl.pallas_call(
        cap_kernel,
        out_shape=jax.ShapeDtypeStruct((n_obj, EMBED), jnp.float32),
        grid_spec=pltpu.PrefetchScalarGridSpec(
            num_scalar_prefetch=0,
            grid=(1,),                                   # whole recurrence in one step
            in_specs=[full_spec(op.shape) for op in operands],
            out_specs=full_spec((n_obj, EMBED)),
        ),
        compiler_params=pltpu.CompilerParams(
            dimension_semantics=("arbitrary",)),         # sequential recurrence
    )
    return fn(*operands)


# ---------------------------------------------------------------------------
# Pure-JAX reference: original (unfolded) math, validates all foldings
# ---------------------------------------------------------------------------
def reference_forward(V, E_feats, p):
    H, Emb = HIDDEN, EMBED
    we_t = p["W_e"].T
    w1_t, b1 = p["FC1_W"].T, p["FC1_b"][None, :]
    wv_t, wh_t, wa_t = p["W_v"].T, p["W_h"].T, p["W_a"].T
    w2_t, b2 = p["FC2_W"].T, p["FC2_b"][None, :]
    w3_t, b3 = p["FC3_W"].T, p["FC3_b"][None, :]

    def gru(x, h, wih, whh, bih, bhh):
        gi = x @ wih.T + bih[None, :]
        gh = h @ whh.T + bhh[None, :]
        r = jax.nn.sigmoid(gi[:, :H] + gh[:, :H])
        z = jax.nn.sigmoid(gi[:, H:2 * H] + gh[:, H:2 * H])
        n = jnp.tanh(gi[:, 2 * H:] + r * gh[:, 2 * H:])
        return (1.0 - z) * n + z * h

    h1 = jnp.zeros((1, H), jnp.float32)
    h2 = jnp.zeros((1, H), jnp.float32)
    tok = jnp.zeros((1, Emb), jnp.float32)
    outs = []
    for i in range(V.shape[0]):
        v_i = V[i:i + 1]
        v_r = v_i + E_feats[i]
        x_t = tok @ we_t
        fc1 = jnp.concatenate([h2, v_i, x_t], axis=1) @ w1_t + b1
        h1 = gru(fc1, h1, p["g1_Wih"], p["g1_Whh"], p["g1_bih"], p["g1_bhh"])
        scores = (v_r @ wv_t + h1 @ wh_t) @ wa_t
        att = jax.nn.softmax(scores, axis=0)
        ctx = jnp.sum(v_r * att, axis=0, keepdims=True)
        fc2 = jnp.concatenate([ctx, h1], axis=1) @ w2_t + b2
        h2 = gru(fc2, h2, p["g2_Wih"], p["g2_Whh"], p["g2_bih"], p["g2_bhh"])
        tok = h2 @ w3_t + b3
        outs.append(tok[0])
    return jnp.stack(outs)


# ---------------------------------------------------------------------------
if __name__ == "__main__":
    key = jax.random.PRNGKey(0)
    kv, ke, kp = jax.random.split(key, 3)

    V = jax.random.normal(kv, (NUM_OBJECTS, NUM_FEATURES), dtype=jnp.float32)
    E = jax.random.normal(ke, (NUM_OBJECTS, NUM_NEIGHBORS, NUM_FEATURES),
                          dtype=jnp.float32)
    params = init_params(kp)

    tokens = attention_cap_forward(V, E, params)
    tokens = jax.block_until_ready(tokens)

    ref = reference_forward(V, E, params)
    # Tolerance covers the (exact) weight-folding rounding plus the EUP
    # approximate reciprocal used for the softmax denominator.
    np.testing.assert_allclose(np.asarray(tokens), np.asarray(ref),
                               rtol=2e-3, atol=2e-3)
    print("KERNEL_OK")
</pallas_src>

<mosaic_0001>
module attributes {stable_mosaic.version = 11 : i64} {
  func.func @cap_kernel(%arg0: i32, %arg1: memref<4x32xf32, #tpu.memory_space<vmem>>, %arg2: memref<4x8x32xf32, #tpu.memory_space<vmem>>, %arg3: memref<368x192xf32, #tpu.memory_space<vmem>>, %arg4: memref<4x192xf32, #tpu.memory_space<vmem>>, %arg5: memref<96x1xf32, #tpu.memory_space<vmem>>, %arg6: memref<64x48xf32, #tpu.memory_space<vmem>>, %arg7: memref<1x48xf32, #tpu.memory_space<vmem>>, %arg8: memref<4x48xf32, #tpu.memory_space<vmem>>) attributes {dimension_semantics = [#tpu.dimension_semantics<arbitrary>], iteration_bounds = array<i64: 1>, scalar_prefetch = 0 : i64, scratch_operands = 0 : i64, tpu.core_type = #tpu.core_type<tc>, window_params = [{pipeline_mode = #tpu.pipeline_mode<synchronous>, transform_indices = @transform_0, window_bounds = array<i64: 4, 32>}, {pipeline_mode = #tpu.pipeline_mode<synchronous>, transform_indices = @transform_1, window_bounds = array<i64: 4, 8, 32>}, {pipeline_mode = #tpu.pipeline_mode<synchronous>, transform_indices = @transform_2, window_bounds = array<i64: 368, 192>}, {pipeline_mode = #tpu.pipeline_mode<synchronous>, transform_indices = @transform_3, window_bounds = array<i64: 4, 192>}, {pipeline_mode = #tpu.pipeline_mode<synchronous>, transform_indices = @transform_4, window_bounds = array<i64: 96, 1>}, {pipeline_mode = #tpu.pipeline_mode<synchronous>, transform_indices = @transform_5, window_bounds = array<i64: 64, 48>}, {pipeline_mode = #tpu.pipeline_mode<synchronous>, transform_indices = @transform_6, window_bounds = array<i64: 1, 48>}, {pipeline_mode = #tpu.pipeline_mode<synchronous>, transform_indices = @transform_7, window_bounds = array<i64: 4, 48>}]} {
    %cst = arith.constant 0.000000e+00 : f32
    %0 = vector.broadcast %cst : f32 to vector<1x64xf32>
    %cst_0 = arith.constant 0.000000e+00 : f32
    %1 = vector.broadcast %cst_0 : f32 to vector<1x64xf32>
    %cst_1 = arith.constant 0.000000e+00 : f32
    %2 = vector.broadcast %cst_1 : f32 to vector<1x48xf32>
    %c0 = arith.constant 0 : index
    %c0_2 = arith.constant 0 : index
    %3 = vector.load %arg1[%c0, %c0_2] : memref<4x32xf32, #tpu.memory_space<vmem>>, vector<1x32xf32>
    %c0_3 = arith.constant 0 : index
    %c0_4 = arith.constant 0 : index
    %c0_5 = arith.constant 0 : index
    %4 = vector.load %arg2[%c0_3, %c0_4, %c0_5] : memref<4x8x32xf32, #tpu.memory_space<vmem>>, vector<1x8x32xf32>
    %5 = vector.shape_cast %4 : vector<1x8x32xf32> to vector<8x32xf32>
    %6 = vector.broadcast %3 : vector<1x32xf32> to vector<8x32xf32>
    %7 = arith.addf %6, %5 : vector<8x32xf32>
    %8 = tpu.concatenate %1, %3, %2 in 1 : vector<1x64xf32>, vector<1x32xf32>, vector<1x48xf32> -> vector<1x144xf32>
    %c0_6 = arith.constant 0 : index
    %c0_7 = arith.constant 0 : index
    %9 = vector.load %arg3[%c0_6, %c0_7] : memref<368x192xf32, #tpu.memory_space<vmem>>, vector<144x192xf32>
    %cst_8 = arith.constant dense<0.000000e+00> : vector<1x192xf32>
    %10 = tpu.matmul %8, %9, %cst_8 {dimension_numbers = #tpu.dot_dimension_numbers<[1], [0], [0], [1], [0, 0, 1, 1], [], []>} : vector<1x144xf32>, vector<144x192xf32>, vector<1x192xf32> -> vector<1x192xf32>
    %c0_9 = arith.constant 0 : index
    %c0_10 = arith.constant 0 : index
    %11 = vector.load %arg4[%c0_9, %c0_10] : memref<4x192xf32, #tpu.memory_space<vmem>>, vector<1x192xf32>
    %12 = arith.addf %10, %11 : vector<1x192xf32>
    %c144 = arith.constant 144 : index
    %c0_11 = arith.constant 0 : index
    %13 = vector.load %arg3[%c144, %c0_11] : memref<368x192xf32, #tpu.memory_space<vmem>>, vector<64x192xf32>
    %cst_12 = arith.constant dense<0.000000e+00> : vector<1x192xf32>
    %14 = tpu.matmul %0, %13, %cst_12 {dimension_numbers = #tpu.dot_dimension_numbers<[1], [0], [0], [1], [0, 0, 1, 1], [], []>} : vector<1x64xf32>, vector<64x192xf32>, vector<1x192xf32> -> vector<1x192xf32>
    %c1 = arith.constant 1 : index
    %c0_13 = arith.constant 0 : index
    %15 = vector.load %arg4[%c1, %c0_13] : memref<4x192xf32, #tpu.memory_space<vmem>>, vector<1x192xf32>
    %16 = arith.addf %14, %15 : vector<1x192xf32>
    %17 = vector.extract_strided_slice %12 {offsets = [0, 0], sizes = [1, 64], strides = [1, 1]} : vector<1x192xf32> to vector<1x64xf32>
    %18 = vector.extract_strided_slice %16 {offsets = [0, 0], sizes = [1, 64], strides = [1, 1]} : vector<1x192xf32> to vector<1x64xf32>
    %19 = arith.addf %17, %18 : vector<1x64xf32>
    %20 = arith.negf %19 : vector<1x64xf32>
    %21 = math.exp %20 : vector<1x64xf32>
    %cst_14 = arith.constant 1.000000e+00 : f32
    %22 = vector.broadcast %cst_14 : f32 to vector<1x64xf32>
    %23 = arith.addf %22, %21 : vector<1x64xf32>
    %24 = arith.divf %22, %23 : vector<1x64xf32>
    %25 = vector.extract_strided_slice %12 {offsets = [0, 64], sizes = [1, 64], strides = [1, 1]} : vector<1x192xf32> to vector<1x64xf32>
    %26 = vector.extract_strided_slice %16 {offsets = [0, 64], sizes = [1, 64], strides = [1, 1]} : vector<1x192xf32> to vector<1x64xf32>
    %27 = arith.addf %25, %26 : vector<1x64xf32>
    %28 = arith.negf %27 : vector<1x64xf32>
    %29 = math.exp %28 : vector<1x64xf32>
    %cst_15 = arith.constant 1.000000e+00 : f32
    %30 = vector.broadcast %cst_15 : f32 to vector<1x64xf32>
    %31 = arith.addf %30, %29 : vector<1x64xf32>
    %32 = arith.divf %30, %31 : vector<1x64xf32>
    %33 = vector.extract_strided_slice %12 {offsets = [0, 128], sizes = [1, 64], strides = [1, 1]} : vector<1x192xf32> to vector<1x64xf32>
    %34 = vector.extract_strided_slice %16 {offsets = [0, 128], sizes = [1, 64], strides = [1, 1]} : vector<1x192xf32> to vector<1x64xf32>
    %35 = arith.mulf %24, %34 : vector<1x64xf32>
    %36 = arith.addf %33, %35 : vector<1x64xf32>
    %37 = math.tanh %36 : vector<1x64xf32>
    %cst_16 = arith.constant 1.000000e+00 : f32
    %38 = vector.broadcast %cst_16 : f32 to vector<1x64xf32>
    %39 = arith.subf %38, %32 : vector<1x64xf32>
    %40 = arith.mulf %39, %37 : vector<1x64xf32>
    %41 = arith.mulf %32, %0 : vector<1x64xf32>
    %42 = arith.addf %40, %41 : vector<1x64xf32>
    %c0_17 = arith.constant 0 : index
    %c0_18 = arith.constant 0 : index
    %43 = vector.load %arg5[%c0_17, %c0_18] : memref<96x1xf32, #tpu.memory_space<vmem>>, vector<32x1xf32>
    %cst_19 = arith.constant dense<0.000000e+00> : vector<8x1xf32>
    %44 = tpu.matmul %7, %43, %cst_19 {dimension_numbers = #tpu.dot_dimension_numbers<[1], [0], [0], [1], [0, 0, 1, 1], [], []>} : vector<8x32xf32>, vector<32x1xf32>, vector<8x1xf32> -> vector<8x1xf32>
    %c32 = arith.constant 32 : index
    %c0_20 = arith.constant 0 : index
    %45 = vector.load %arg5[%c32, %c0_20] : memref<96x1xf32, #tpu.memory_space<vmem>>, vector<64x1xf32>
    %cst_21 = arith.constant dense<0.000000e+00> : vector<1x1xf32>
    %46 = tpu.matmul %42, %45, %cst_21 {dimension_numbers = #tpu.dot_dimension_numbers<[1], [0], [0], [1], [0, 0, 1, 1], [], []>} : vector<1x64xf32>, vector<64x1xf32>, vector<1x1xf32> -> vector<1x1xf32>
    %47 = vector.broadcast %46 : vector<1x1xf32> to vector<8x1xf32>
    %48 = arith.addf %44, %47 : vector<8x1xf32>
    %cst_22 = arith.constant dense<0xFF800000> : vector<1xf32>
    %49 = vector.multi_reduction <maximumf>, %48, %cst_22 [0] : vector<8x1xf32> to vector<1xf32>
    %50 = vector.shape_cast %49 : vector<1xf32> to vector<1x1xf32>
    %51 = vector.broadcast %50 : vector<1x1xf32> to vector<8x1xf32>
    %52 = arith.subf %48, %51 : vector<8x1xf32>
    %53 = math.exp %52 : vector<8x1xf32>
    %cst_23 = arith.constant dense<0.000000e+00> : vector<1xf32>
    %54 = vector.multi_reduction <add>, %53, %cst_23 [0] : vector<8x1xf32> to vector<1xf32>
    %55 = vector.shape_cast %54 : vector<1xf32> to vector<1x1xf32>
    %56 = tpu.reciprocal %55 {approx = true} : vector<1x1xf32> -> vector<1x1xf32>
    %57 = vector.broadcast %56 : vector<1x1xf32> to vector<8x1xf32>
    %58 = arith.mulf %53, %57 : vector<8x1xf32>
    %59 = vector.broadcast %58 : vector<8x1xf32> to vector<8x32xf32>
    %60 = arith.mulf %7, %59 : vector<8x32xf32>
    %cst_24 = arith.constant dense<0.000000e+00> : vector<32xf32>
    %61 = vector.multi_reduction <add>, %60, %cst_24 [0] : vector<8x32xf32> to vector<32xf32>
    %62 = vector.shape_cast %61 : vector<32xf32> to vector<1x32xf32>
    %63 = tpu.concatenate %62, %42 in 1 : vector<1x32xf32>, vector<1x64xf32> -> vector<1x96xf32>
    %c208 = arith.constant 208 : index
    %c0_25 = arith.constant 0 : index
    %64 = vector.load %arg3[%c208, %c0_25] : memref<368x192xf32, #tpu.memory_space<vmem>>, vector<96x192xf32>
    %cst_26 = arith.constant dense<0.000000e+00> : vector<1x192xf32>
    %65 = tpu.matmul %63, %64, %cst_26 {dimension_numbers = #tpu.dot_dimension_numbers<[1], [0], [0], [1], [0, 0, 1, 1], [], []>} : vector<1x96xf32>, vector<96x192xf32>, vector<1x192xf32> -> vector<1x192xf32>
    %c2 = arith.constant 2 : index
    %c0_27 = arith.constant 0 : index
    %66 = vector.load %arg4[%c2, %c0_27] : memref<4x192xf32, #tpu.memory_space<vmem>>, vector<1x192xf32>
    %67 = arith.addf %65, %66 : vector<1x192xf32>
    %c304 = arith.constant 304 : index
    %c0_28 = arith.constant 0 : index
    %68 = vector.load %arg3[%c304, %c0_28] : memref<368x192xf32, #tpu.memory_space<vmem>>, vector<64x192xf32>
    %cst_29 = arith.constant dense<0.000000e+00> : vector<1x192xf32>
    %69 = tpu.matmul %1, %68, %cst_29 {dimension_numbers = #tpu.dot_dimension_numbers<[1], [0], [0], [1], [0, 0, 1, 1], [], []>} : vector<1x64xf32>, vector<64x192xf32>, vector<1x192xf32> -> vector<1x192xf32>
    %c3 = arith.constant 3 : index
    %c0_30 = arith.constant 0 : index
    %70 = vector.load %arg4[%c3, %c0_30] : memref<4x192xf32, #tpu.memory_space<vmem>>, vector<1x192xf32>
    %71 = arith.addf %69, %70 : vector<1x192xf32>
    %72 = vector.extract_strided_slice %67 {offsets = [0, 0], sizes = [1, 64], strides = [1, 1]} : vector<1x192xf32> to vector<1x64xf32>
    %73 = vector.extract_strided_slice %71 {offsets = [0, 0], sizes = [1, 64], strides = [1, 1]} : vector<1x192xf32> to vector<1x64xf32>
    %74 = arith.addf %72, %73 : vector<1x64xf32>
    %75 = arith.negf %74 : vector<1x64xf32>
    %76 = math.exp %75 : vector<1x64xf32>
    %cst_31 = arith.constant 1.000000e+00 : f32
    %77 = vector.broadcast %cst_31 : f32 to vector<1x64xf32>
    %78 = arith.addf %77, %76 : vector<1x64xf32>
    %79 = arith.divf %77, %78 : vector<1x64xf32>
    %80 = vector.extract_strided_slice %67 {offsets = [0, 64], sizes = [1, 64], strides = [1, 1]} : vector<1x192xf32> to vector<1x64xf32>
    %81 = vector.extract_strided_slice %71 {offsets = [0, 64], sizes = [1, 64], strides = [1, 1]} : vector<1x192xf32> to vector<1x64xf32>
    %82 = arith.addf %80, %81 : vector<1x64xf32>
    %83 = arith.negf %82 : vector<1x64xf32>
    %84 = math.exp %83 : vector<1x64xf32>
    %cst_32 = arith.constant 1.000000e+00 : f32
    %85 = vector.broadcast %cst_32 : f32 to vector<1x64xf32>
    %86 = arith.addf %85, %84 : vector<1x64xf32>
    %87 = arith.divf %85, %86 : vector<1x64xf32>
    %88 = vector.extract_strided_slice %67 {offsets = [0, 128], sizes = [1, 64], strides = [1, 1]} : vector<1x192xf32> to vector<1x64xf32>
    %89 = vector.extract_strided_slice %71 {offsets = [0, 128], sizes = [1, 64], strides = [1, 1]} : vector<1x192xf32> to vector<1x64xf32>
    %90 = arith.mulf %79, %89 : vector<1x64xf32>
    %91 = arith.addf %88, %90 : vector<1x64xf32>
    %92 = math.tanh %91 : vector<1x64xf32>
    %cst_33 = arith.constant 1.000000e+00 : f32
    %93 = vector.broadcast %cst_33 : f32 to vector<1x64xf32>
    %94 = arith.subf %93, %87 : vector<1x64xf32>
    %95 = arith.mulf %94, %92 : vector<1x64xf32>
    %96 = arith.mulf %87, %1 : vector<1x64xf32>
    %97 = arith.addf %95, %96 : vector<1x64xf32>
    %c0_34 = arith.constant 0 : index
    %c0_35 = arith.constant 0 : index
    %98 = vector.load %arg6[%c0_34, %c0_35] : memref<64x48xf32, #tpu.memory_space<vmem>>, vector<64x48xf32>
    %cst_36 = arith.constant dense<0.000000e+00> : vector<1x48xf32>
    %99 = tpu.matmul %97, %98, %cst_36 {dimension_numbers = #tpu.dot_dimension_numbers<[1], [0], [0], [1], [0, 0, 1, 1], [], []>} : vector<1x64xf32>, vector<64x48xf32>, vector<1x48xf32> -> vector<1x48xf32>
    %c0_37 = arith.constant 0 : index
    %c0_38 = arith.constant 0 : index
    %100 = vector.load %arg7[%c0_37, %c0_38] : memref<1x48xf32, #tpu.memory_space<vmem>>, vector<1x48xf32>
    %101 = arith.addf %99, %100 : vector<1x48xf32>
    %c1_39 = arith.constant 1 : index
    %c0_40 = arith.constant 0 : index
    %102 = vector.load %arg1[%c1_39, %c0_40] : memref<4x32xf32, #tpu.memory_space<vmem>>, vector<1x32xf32>
    %c1_41 = arith.constant 1 : index
    %c0_42 = arith.constant 0 : index
    %c0_43 = arith.constant 0 : index
    %103 = vector.load %arg2[%c1_41, %c0_42, %c0_43] : memref<4x8x32xf32, #tpu.memory_space<vmem>>, vector<1x8x32xf32>
    %104 = vector.shape_cast %103 : vector<1x8x32xf32> to vector<8x32xf32>
    %105 = vector.broadcast %102 : vector<1x32xf32> to vector<8x32xf32>
    %106 = arith.addf %105, %104 : vector<8x32xf32>
    %107 = tpu.concatenate %97, %102, %101 in 1 : vector<1x64xf32>, vector<1x32xf32>, vector<1x48xf32> -> vector<1x144xf32>
    %c0_44 = arith.constant 0 : index
    %c0_45 = arith.constant 0 : index
    %108 = vector.load %arg3[%c0_44, %c0_45] : memref<368x192xf32, #tpu.memory_space<vmem>>, vector<144x192xf32>
    %cst_46 = arith.constant dense<0.000000e+00> : vector<1x192xf32>
    %109 = tpu.matmul %107, %108, %cst_46 {dimension_numbers = #tpu.dot_dimension_numbers<[1], [0], [0], [1], [0, 0, 1, 1], [], []>} : vector<1x144xf32>, vector<144x192xf32>, vector<1x192xf32> -> vector<1x192xf32>
    %c0_47 = arith.constant 0 : index
    %c0_48 = arith.constant 0 : index
    %110 = vector.load %arg4[%c0_47, %c0_48] : memref<4x192xf32, #tpu.memory_space<vmem>>, vector<1x192xf32>
    %111 = arith.addf %109, %110 : vector<1x192xf32>
    %c144_49 = arith.constant 144 : index
    %c0_50 = arith.constant 0 : index
    %112 = vector.load %arg3[%c144_49, %c0_50] : memref<368x192xf32, #tpu.memory_space<vmem>>, vector<64x192xf32>
    %cst_51 = arith.constant dense<0.000000e+00> : vector<1x192xf32>
    %113 = tpu.matmul %42, %112, %cst_51 {dimension_numbers = #tpu.dot_dimension_numbers<[1], [0], [0], [1], [0, 0, 1, 1], [], []>} : vector<1x64xf32>, vector<64x192xf32>, vector<1x192xf32> -> vector<1x192xf32>
    %c1_52 = arith.constant 1 : index
    %c0_53 = arith.constant 0 : index
    %114 = vector.load %arg4[%c1_52, %c0_53] : memref<4x192xf32, #tpu.memory_space<vmem>>, vector<1x192xf32>
    %115 = arith.addf %113, %114 : vector<1x192xf32>
    %116 = vector.extract_strided_slice %111 {offsets = [0, 0], sizes = [1, 64], strides = [1, 1]} : vector<1x192xf32> to vector<1x64xf32>
    %117 = vector.extract_strided_slice %115 {offsets = [0, 0], sizes = [1, 64], strides = [1, 1]} : vector<1x192xf32> to vector<1x64xf32>
    %118 = arith.addf %116, %117 : vector<1x64xf32>
    %119 = arith.negf %118 : vector<1x64xf32>
    %120 = math.exp %119 : vector<1x64xf32>
    %cst_54 = arith.constant 1.000000e+00 : f32
    %121 = vector.broadcast %cst_54 : f32 to vector<1x64xf32>
    %122 = arith.addf %121, %120 : vector<1x64xf32>
    %123 = arith.divf %121, %122 : vector<1x64xf32>
    %124 = vector.extract_strided_slice %111 {offsets = [0, 64], sizes = [1, 64], strides = [1, 1]} : vector<1x192xf32> to vector<1x64xf32>
    %125 = vector.extract_strided_slice %115 {offsets = [0, 64], sizes = [1, 64], strides = [1, 1]} : vector<1x192xf32> to vector<1x64xf32>
    %126 = arith.addf %124, %125 : vector<1x64xf32>
    %127 = arith.negf %126 : vector<1x64xf32>
    %128 = math.exp %127 : vector<1x64xf32>
    %cst_55 = arith.constant 1.000000e+00 : f32
    %129 = vector.broadcast %cst_55 : f32 to vector<1x64xf32>
    %130 = arith.addf %129, %128 : vector<1x64xf32>
    %131 = arith.divf %129, %130 : vector<1x64xf32>
    %132 = vector.extract_strided_slice %111 {offsets = [0, 128], sizes = [1, 64], strides = [1, 1]} : vector<1x192xf32> to vector<1x64xf32>
    %133 = vector.extract_strided_slice %115 {offsets = [0, 128], sizes = [1, 64], strides = [1, 1]} : vector<1x192xf32> to vector<1x64xf32>
    %134 = arith.mulf %123, %133 : vector<1x64xf32>
    %135 = arith.addf %132, %134 : vector<1x64xf32>
    %136 = math.tanh %135 : vector<1x64xf32>
    %cst_56 = arith.constant 1.000000e+00 : f32
    %137 = vector.broadcast %cst_56 : f32 to vector<1x64xf32>
    %138 = arith.subf %137, %131 : vector<1x64xf32>
    %139 = arith.mulf %138, %136 : vector<1x64xf32>
    %140 = arith.mulf %131, %42 : vector<1x64xf32>
    %141 = arith.addf %139, %140 : vector<1x64xf32>
    %c0_57 = arith.constant 0 : index
    %c0_58 = arith.constant 0 : index
    %142 = vector.load %arg5[%c0_57, %c0_58] : memref<96x1xf32, #tpu.memory_space<vmem>>, vector<32x1xf32>
    %cst_59 = arith.constant dense<0.000000e+00> : vector<8x1xf32>
    %143 = tpu.matmul %106, %142, %cst_59 {dimension_numbers = #tpu.dot_dimension_numbers<[1], [0], [0], [1], [0, 0, 1, 1], [], []>} : vector<8x32xf32>, vector<32x1xf32>, vector<8x1xf32> -> vector<8x1xf32>
    %c32_60 = arith.constant 32 : index
    %c0_61 = arith.constant 0 : index
    %144 = vector.load %arg5[%c32_60, %c0_61] : memref<96x1xf32, #tpu.memory_space<vmem>>, vector<64x1xf32>
    %cst_62 = arith.constant dense<0.000000e+00> : vector<1x1xf32>
    %145 = tpu.matmul %141, %144, %cst_62 {dimension_numbers = #tpu.dot_dimension_numbers<[1], [0], [0], [1], [0, 0, 1, 1], [], []>} : vector<1x64xf32>, vector<64x1xf32>, vector<1x1xf32> -> vector<1x1xf32>
    %146 = vector.broadcast %145 : vector<1x1xf32> to vector<8x1xf32>
    %147 = arith.addf %143, %146 : vector<8x1xf32>
    %cst_63 = arith.constant dense<0xFF800000> : vector<1xf32>
    %148 = vector.multi_reduction <maximumf>, %147, %cst_63 [0] : vector<8x1xf32> to vector<1xf32>
    %149 = vector.shape_cast %148 : vector<1xf32> to vector<1x1xf32>
    %150 = vector.broadcast %149 : vector<1x1xf32> to vector<8x1xf32>
    %151 = arith.subf %147, %150 : vector<8x1xf32>
    %152 = math.exp %151 : vector<8x1xf32>
    %cst_64 = arith.constant dense<0.000000e+00> : vector<1xf32>
    %153 = vector.multi_reduction <add>, %152, %cst_64 [0] : vector<8x1xf32> to vector<1xf32>
    %154 = vector.shape_cast %153 : vector<1xf32> to vector<1x1xf32>
    %155 = tpu.reciprocal %154 {approx = true} : vector<1x1xf32> -> vector<1x1xf32>
    %156 = vector.broadcast %155 : vector<1x1xf32> to vector<8x1xf32>
    %157 = arith.mulf %152, %156 : vector<8x1xf32>
    %158 = vector.broadcast %157 : vector<8x1xf32> to vector<8x32xf32>
    %159 = arith.mulf %106, %158 : vector<8x32xf32>
    %cst_65 = arith.constant dense<0.000000e+00> : vector<32xf32>
    %160 = vector.multi_reduction <add>, %159, %cst_65 [0] : vector<8x32xf32> to vector<32xf32>
    %161 = vector.shape_cast %160 : vector<32xf32> to vector<1x32xf32>
    %162 = tpu.concatenate %161, %141 in 1 : vector<1x32xf32>, vector<1x64xf32> -> vector<1x96xf32>
    %c208_66 = arith.constant 208 : index
    %c0_67 = arith.constant 0 : index
    %163 = vector.load %arg3[%c208_66, %c0_67] : memref<368x192xf32, #tpu.memory_space<vmem>>, vector<96x192xf32>
    %cst_68 = arith.constant dense<0.000000e+00> : vector<1x192xf32>
    %164 = tpu.matmul %162, %163, %cst_68 {dimension_numbers = #tpu.dot_dimension_numbers<[1], [0], [0], [1], [0, 0, 1, 1], [], []>} : vector<1x96xf32>, vector<96x192xf32>, vector<1x192xf32> -> vector<1x192xf32>
    %c2_69 = arith.constant 2 : index
    %c0_70 = arith.constant 0 : index
    %165 = vector.load %arg4[%c2_69, %c0_70] : memref<4x192xf32, #tpu.memory_space<vmem>>, vector<1x192xf32>
    %166 = arith.addf %164, %165 : vector<1x192xf32>
    %c304_71 = arith.constant 304 : index
    %c0_72 = arith.constant 0 : index
    %167 = vector.load %arg3[%c304_71, %c0_72] : memref<368x192xf32, #tpu.memory_space<vmem>>, vector<64x192xf32>
    %cst_73 = arith.constant dense<0.000000e+00> : vector<1x192xf32>
    %168 = tpu.matmul %97, %167, %cst_73 {dimension_numbers = #tpu.dot_dimension_numbers<[1], [0], [0], [1], [0, 0, 1, 1], [], []>} : vector<1x64xf32>, vector<64x192xf32>, vector<1x192xf32> -> vector<1x192xf32>
    %c3_74 = arith.constant 3 : index
    %c0_75 = arith.constant 0 : index
    %169 = vector.load %arg4[%c3_74, %c0_75] : memref<4x192xf32, #tpu.memory_space<vmem>>, vector<1x192xf32>
    %170 = arith.addf %168, %169 : vector<1x192xf32>
    %171 = vector.extract_strided_slice %166 {offsets = [0, 0], sizes = [1, 64], strides = [1, 1]} : vector<1x192xf32> to vector<1x64xf32>
    %172 = vector.extract_strided_slice %170 {offsets = [0, 0], sizes = [1, 64], strides = [1, 1]} : vector<1x192xf32> to vector<1x64xf32>
    %173 = arith.addf %171, %172 : vector<1x64xf32>
    %174 = arith.negf %173 : vector<1x64xf32>
    %175 = math.exp %174 : vector<1x64xf32>
    %cst_76 = arith.constant 1.000000e+00 : f32
    %176 = vector.broadcast %cst_76 : f32 to vector<1x64xf32>
    %177 = arith.addf %176, %175 : vector<1x64xf32>
    %178 = arith.divf %176, %177 : vector<1x64xf32>
    %179 = vector.extract_strided_slice %166 {offsets = [0, 64], sizes = [1, 64], strides = [1, 1]} : vector<1x192xf32> to vector<1x64xf32>
    %180 = vector.extract_strided_slice %170 {offsets = [0, 64], sizes = [1, 64], strides = [1, 1]} : vector<1x192xf32> to vector<1x64xf32>
    %181 = arith.addf %179, %180 : vector<1x64xf32>
    %182 = arith.negf %181 : vector<1x64xf32>
    %183 = math.exp %182 : vector<1x64xf32>
    %cst_77 = arith.constant 1.000000e+00 : f32
    %184 = vector.broadcast %cst_77 : f32 to vector<1x64xf32>
    %185 = arith.addf %184, %183 : vector<1x64xf32>
    %186 = arith.divf %184, %185 : vector<1x64xf32>
    %187 = vector.extract_strided_slice %166 {offsets = [0, 128], sizes = [1, 64], strides = [1, 1]} : vector<1x192xf32> to vector<1x64xf32>
    %188 = vector.extract_strided_slice %170 {offsets = [0, 128], sizes = [1, 64], strides = [1, 1]} : vector<1x192xf32> to vector<1x64xf32>
    %189 = arith.mulf %178, %188 : vector<1x64xf32>
    %190 = arith.addf %187, %189 : vector<1x64xf32>
    %191 = math.tanh %190 : vector<1x64xf32>
    %cst_78 = arith.constant 1.000000e+00 : f32
    %192 = vector.broadcast %cst_78 : f32 to vector<1x64xf32>
    %193 = arith.subf %192, %186 : vector<1x64xf32>
    %194 = arith.mulf %193, %191 : vector<1x64xf32>
    %195 = arith.mulf %186, %97 : vector<1x64xf32>
    %196 = arith.addf %194, %195 : vector<1x64xf32>
    %c0_79 = arith.constant 0 : index
    %c0_80 = arith.constant 0 : index
    %197 = vector.load %arg6[%c0_79, %c0_80] : memref<64x48xf32, #tpu.memory_space<vmem>>, vector<64x48xf32>
    %cst_81 = arith.constant dense<0.000000e+00> : vector<1x48xf32>
    %198 = tpu.matmul %196, %197, %cst_81 {dimension_numbers = #tpu.dot_dimension_numbers<[1], [0], [0], [1], [0, 0, 1, 1], [], []>} : vector<1x64xf32>, vector<64x48xf32>, vector<1x48xf32> -> vector<1x48xf32>
    %c0_82 = arith.constant 0 : index
    %c0_83 = arith.constant 0 : index
    %199 = vector.load %arg7[%c0_82, %c0_83] : memref<1x48xf32, #tpu.memory_space<vmem>>, vector<1x48xf32>
    %200 = arith.addf %198, %199 : vector<1x48xf32>
    %c2_84 = arith.constant 2 : index
    %c0_85 = arith.constant 0 : index
    %201 = vector.load %arg1[%c2_84, %c0_85] : memref<4x32xf32, #tpu.memory_space<vmem>>, vector<1x32xf32>
    %c2_86 = arith.constant 2 : index
    %c0_87 = arith.constant 0 : index
    %c0_88 = arith.constant 0 : index
    %202 = vector.load %arg2[%c2_86, %c0_87, %c0_88] : memref<4x8x32xf32, #tpu.memory_space<vmem>>, vector<1x8x32xf32>
    %203 = vector.shape_cast %202 : vector<1x8x32xf32> to vector<8x32xf32>
    %204 = vector.broadcast %201 : vector<1x32xf32> to vector<8x32xf32>
    %205 = arith.addf %204, %203 : vector<8x32xf32>
    %206 = tpu.concatenate %196, %201, %200 in 1 : vector<1x64xf32>, vector<1x32xf32>, vector<1x48xf32> -> vector<1x144xf32>
    %c0_89 = arith.constant 0 : index
    %c0_90 = arith.constant 0 : index
    %207 = vector.load %arg3[%c0_89, %c0_90] : memref<368x192xf32, #tpu.memory_space<vmem>>, vector<144x192xf32>
    %cst_91 = arith.constant dense<0.000000e+00> : vector<1x192xf32>
    %208 = tpu.matmul %206, %207, %cst_91 {dimension_numbers = #tpu.dot_dimension_numbers<[1], [0], [0], [1], [0, 0, 1, 1], [], []>} : vector<1x144xf32>, vector<144x192xf32>, vector<1x192xf32> -> vector<1x192xf32>
    %c0_92 = arith.constant 0 : index
    %c0_93 = arith.constant 0 : index
    %209 = vector.load %arg4[%c0_92, %c0_93] : memref<4x192xf32, #tpu.memory_space<vmem>>, vector<1x192xf32>
    %210 = arith.addf %208, %209 : vector<1x192xf32>
    %c144_94 = arith.constant 144 : index
    %c0_95 = arith.constant 0 : index
    %211 = vector.load %arg3[%c144_94, %c0_95] : memref<368x192xf32, #tpu.memory_space<vmem>>, vector<64x192xf32>
    %cst_96 = arith.constant dense<0.000000e+00> : vector<1x192xf32>
    %212 = tpu.matmul %141, %211, %cst_96 {dimension_numbers = #tpu.dot_dimension_numbers<[1], [0], [0], [1], [0, 0, 1, 1], [], []>} : vector<1x64xf32>, vector<64x192xf32>, vector<1x192xf32> -> vector<1x192xf32>
    %c1_97 = arith.constant 1 : index
    %c0_98 = arith.constant 0 : index
    %213 = vector.load %arg4[%c1_97, %c0_98] : memref<4x192xf32, #tpu.memory_space<vmem>>, vector<1x192xf32>
    %214 = arith.addf %212, %213 : vector<1x192xf32>
    %215 = vector.extract_strided_slice %210 {offsets = [0, 0], sizes = [1, 64], strides = [1, 1]} : vector<1x192xf32> to vector<1x64xf32>
    %216 = vector.extract_strided_slice %214 {offsets = [0, 0], sizes = [1, 64], strides = [1, 1]} : vector<1x192xf32> to vector<1x64xf32>
    %217 = arith.addf %215, %216 : vector<1x64xf32>
    %218 = arith.negf %217 : vector<1x64xf32>
    %219 = math.exp %218 : vector<1x64xf32>
    %cst_99 = arith.constant 1.000000e+00 : f32
    %220 = vector.broadcast %cst_99 : f32 to vector<1x64xf32>
    %221 = arith.addf %220, %219 : vector<1x64xf32>
    %222 = arith.divf %220, %221 : vector<1x64xf32>
    %223 = vector.extract_strided_slice %210 {offsets = [0, 64], sizes = [1, 64], strides = [1, 1]} : vector<1x192xf32> to vector<1x64xf32>
    %224 = vector.extract_strided_slice %214 {offsets = [0, 64], sizes = [1, 64], strides = [1, 1]} : vector<1x192xf32> to vector<1x64xf32>
    %225 = arith.addf %223, %224 : vector<1x64xf32>
    %226 = arith.negf %225 : vector<1x64xf32>
    %227 = math.exp %226 : vector<1x64xf32>
    %cst_100 = arith.constant 1.000000e+00 : f32
    %228 = vector.broadcast %cst_100 : f32 to vector<1x64xf32>
    %229 = arith.addf %228, %227 : vector<1x64xf32>
    %230 = arith.divf %228, %229 : vector<1x64xf32>
    %231 = vector.extract_strided_slice %210 {offsets = [0, 128], sizes = [1, 64], strides = [1, 1]} : vector<1x192xf32> to vector<1x64xf32>
    %232 = vector.extract_strided_slice %214 {offsets = [0, 128], sizes = [1, 64], strides = [1, 1]} : vector<1x192xf32> to vector<1x64xf32>
    %233 = arith.mulf %222, %232 : vector<1x64xf32>
    %234 = arith.addf %231, %233 : vector<1x64xf32>
    %235 = math.tanh %234 : vector<1x64xf32>
    %cst_101 = arith.constant 1.000000e+00 : f32
    %236 = vector.broadcast %cst_101 : f32 to vector<1x64xf32>
    %237 = arith.subf %236, %230 : vector<1x64xf32>
    %238 = arith.mulf %237, %235 : vector<1x64xf32>
    %239 = arith.mulf %230, %141 : vector<1x64xf32>
    %240 = arith.addf %238, %239 : vector<1x64xf32>
    %c0_102 = arith.constant 0 : index
    %c0_103 = arith.constant 0 : index
    %241 = vector.load %arg5[%c0_102, %c0_103] : memref<96x1xf32, #tpu.memory_space<vmem>>, vector<32x1xf32>
    %cst_104 = arith.constant dense<0.000000e+00> : vector<8x1xf32>
    %242 = tpu.matmul %205, %241, %cst_104 {dimension_numbers = #tpu.dot_dimension_numbers<[1], [0], [0], [1], [0, 0, 1, 1], [], []>} : vector<8x32xf32>, vector<32x1xf32>, vector<8x1xf32> -> vector<8x1xf32>
    %c32_105 = arith.constant 32 : index
    %c0_106 = arith.constant 0 : index
    %243 = vector.load %arg5[%c32_105, %c0_106] : memref<96x1xf32, #tpu.memory_space<vmem>>, vector<64x1xf32>
    %cst_107 = arith.constant dense<0.000000e+00> : vector<1x1xf32>
    %244 = tpu.matmul %240, %243, %cst_107 {dimension_numbers = #tpu.dot_dimension_numbers<[1], [0], [0], [1], [0, 0, 1, 1], [], []>} : vector<1x64xf32>, vector<64x1xf32>, vector<1x1xf32> -> vector<1x1xf32>
    %245 = vector.broadcast %244 : vector<1x1xf32> to vector<8x1xf32>
    %246 = arith.addf %242, %245 : vector<8x1xf32>
    %cst_108 = arith.constant dense<0xFF800000> : vector<1xf32>
    %247 = vector.multi_reduction <maximumf>, %246, %cst_108 [0] : vector<8x1xf32> to vector<1xf32>
    %248 = vector.shape_cast %247 : vector<1xf32> to vector<1x1xf32>
    %249 = vector.broadcast %248 : vector<1x1xf32> to vector<8x1xf32>
    %250 = arith.subf %246, %249 : vector<8x1xf32>
    %251 = math.exp %250 : vector<8x1xf32>
    %cst_109 = arith.constant dense<0.000000e+00> : vector<1xf32>
    %252 = vector.multi_reduction <add>, %251, %cst_109 [0] : vector<8x1xf32> to vector<1xf32>
    %253 = vector.shape_cast %252 : vector<1xf32> to vector<1x1xf32>
    %254 = tpu.reciprocal %253 {approx = true} : vector<1x1xf32> -> vector<1x1xf32>
    %255 = vector.broadcast %254 : vector<1x1xf32> to vector<8x1xf32>
    %256 = arith.mulf %251, %255 : vector<8x1xf32>
    %257 = vector.broadcast %256 : vector<8x1xf32> to vector<8x32xf32>
    %258 = arith.mulf %205, %257 : vector<8x32xf32>
    %cst_110 = arith.constant dense<0.000000e+00> : vector<32xf32>
    %259 = vector.multi_reduction <add>, %258, %cst_110 [0] : vector<8x32xf32> to vector<32xf32>
    %260 = vector.shape_cast %259 : vector<32xf32> to vector<1x32xf32>
    %261 = tpu.concatenate %260, %240 in 1 : vector<1x32xf32>, vector<1x64xf32> -> vector<1x96xf32>
    %c208_111 = arith.constant 208 : index
    %c0_112 = arith.constant 0 : index
    %262 = vector.load %arg3[%c208_111, %c0_112] : memref<368x192xf32, #tpu.memory_space<vmem>>, vector<96x192xf32>
    %cst_113 = arith.constant dense<0.000000e+00> : vector<1x192xf32>
    %263 = tpu.matmul %261, %262, %cst_113 {dimension_numbers = #tpu.dot_dimension_numbers<[1], [0], [0], [1], [0, 0, 1, 1], [], []>} : vector<1x96xf32>, vector<96x192xf32>, vector<1x192xf32> -> vector<1x192xf32>
    %c2_114 = arith.constant 2 : index
    %c0_115 = arith.constant 0 : index
    %264 = vector.load %arg4[%c2_114, %c0_115] : memref<4x192xf32, #tpu.memory_space<vmem>>, vector<1x192xf32>
    %265 = arith.addf %263, %264 : vector<1x192xf32>
    %c304_116 = arith.constant 304 : index
    %c0_117 = arith.constant 0 : index
    %266 = vector.load %arg3[%c304_116, %c0_117] : memref<368x192xf32, #tpu.memory_space<vmem>>, vector<64x192xf32>
    %cst_118 = arith.constant dense<0.000000e+00> : vector<1x192xf32>
    %267 = tpu.matmul %196, %266, %cst_118 {dimension_numbers = #tpu.dot_dimension_numbers<[1], [0], [0], [1], [0, 0, 1, 1], [], []>} : vector<1x64xf32>, vector<64x192xf32>, vector<1x192xf32> -> vector<1x192xf32>
    %c3_119 = arith.constant 3 : index
    %c0_120 = arith.constant 0 : index
    %268 = vector.load %arg4[%c3_119, %c0_120] : memref<4x192xf32, #tpu.memory_space<vmem>>, vector<1x192xf32>
    %269 = arith.addf %267, %268 : vector<1x192xf32>
    %270 = vector.extract_strided_slice %265 {offsets = [0, 0], sizes = [1, 64], strides = [1, 1]} : vector<1x192xf32> to vector<1x64xf32>
    %271 = vector.extract_strided_slice %269 {offsets = [0, 0], sizes = [1, 64], strides = [1, 1]} : vector<1x192xf32> to vector<1x64xf32>
    %272 = arith.addf %270, %271 : vector<1x64xf32>
    %273 = arith.negf %272 : vector<1x64xf32>
    %274 = math.exp %273 : vector<1x64xf32>
    %cst_121 = arith.constant 1.000000e+00 : f32
    %275 = vector.broadcast %cst_121 : f32 to vector<1x64xf32>
    %276 = arith.addf %275, %274 : vector<1x64xf32>
    %277 = arith.divf %275, %276 : vector<1x64xf32>
    %278 = vector.extract_strided_slice %265 {offsets = [0, 64], sizes = [1, 64], strides = [1, 1]} : vector<1x192xf32> to vector<1x64xf32>
    %279 = vector.extract_strided_slice %269 {offsets = [0, 64], sizes = [1, 64], strides = [1, 1]} : vector<1x192xf32> to vector<1x64xf32>
    %280 = arith.addf %278, %279 : vector<1x64xf32>
    %281 = arith.negf %280 : vector<1x64xf32>
    %282 = math.exp %281 : vector<1x64xf32>
    %cst_122 = arith.constant 1.000000e+00 : f32
    %283 = vector.broadcast %cst_122 : f32 to vector<1x64xf32>
    %284 = arith.addf %283, %282 : vector<1x64xf32>
    %285 = arith.divf %283, %284 : vector<1x64xf32>
    %286 = vector.extract_strided_slice %265 {offsets = [0, 128], sizes = [1, 64], strides = [1, 1]} : vector<1x192xf32> to vector<1x64xf32>
    %287 = vector.extract_strided_slice %269 {offsets = [0, 128], sizes = [1, 64], strides = [1, 1]} : vector<1x192xf32> to vector<1x64xf32>
    %288 = arith.mulf %277, %287 : vector<1x64xf32>
    %289 = arith.addf %286, %288 : vector<1x64xf32>
    %290 = math.tanh %289 : vector<1x64xf32>
    %cst_123 = arith.constant 1.000000e+00 : f32
    %291 = vector.broadcast %cst_123 : f32 to vector<1x64xf32>
    %292 = arith.subf %291, %285 : vector<1x64xf32>
    %293 = arith.mulf %292, %290 : vector<1x64xf32>
    %294 = arith.mulf %285, %196 : vector<1x64xf32>
    %295 = arith.addf %293, %294 : vector<1x64xf32>
    %c0_124 = arith.constant 0 : index
    %c0_125 = arith.constant 0 : index
    %296 = vector.load %arg6[%c0_124, %c0_125] : memref<64x48xf32, #tpu.memory_space<vmem>>, vector<64x48xf32>
    %cst_126 = arith.constant dense<0.000000e+00> : vector<1x48xf32>
    %297 = tpu.matmul %295, %296, %cst_126 {dimension_numbers = #tpu.dot_dimension_numbers<[1], [0], [0], [1], [0, 0, 1, 1], [], []>} : vector<1x64xf32>, vector<64x48xf32>, vector<1x48xf32> -> vector<1x48xf32>
    %c0_127 = arith.constant 0 : index
    %c0_128 = arith.constant 0 : index
    %298 = vector.load %arg7[%c0_127, %c0_128] : memref<1x48xf32, #tpu.memory_space<vmem>>, vector<1x48xf32>
    %299 = arith.addf %297, %298 : vector<1x48xf32>
    %c3_129 = arith.constant 3 : index
    %c0_130 = arith.constant 0 : index
    %300 = vector.load %arg1[%c3_129, %c0_130] : memref<4x32xf32, #tpu.memory_space<vmem>>, vector<1x32xf32>
    %c3_131 = arith.constant 3 : index
    %c0_132 = arith.constant 0 : index
    %c0_133 = arith.constant 0 : index
    %301 = vector.load %arg2[%c3_131, %c0_132, %c0_133] : memref<4x8x32xf32, #tpu.memory_space<vmem>>, vector<1x8x32xf32>
    %302 = vector.shape_cast %301 : vector<1x8x32xf32> to vector<8x32xf32>
    %303 = vector.broadcast %300 : vector<1x32xf32> to vector<8x32xf32>
    %304 = arith.addf %303, %302 : vector<8x32xf32>
    %305 = tpu.concatenate %295, %300, %299 in 1 : vector<1x64xf32>, vector<1x32xf32>, vector<1x48xf32> -> vector<1x144xf32>
    %c0_134 = arith.constant 0 : index
    %c0_135 = arith.constant 0 : index
    %306 = vector.load %arg3[%c0_134, %c0_135] : memref<368x192xf32, #tpu.memory_space<vmem>>, vector<144x192xf32>
    %cst_136 = arith.constant dense<0.000000e+00> : vector<1x192xf32>
    %307 = tpu.matmul %305, %306, %cst_136 {dimension_numbers = #tpu.dot_dimension_numbers<[1], [0], [0], [1], [0, 0, 1, 1], [], []>} : vector<1x144xf32>, vector<144x192xf32>, vector<1x192xf32> -> vector<1x192xf32>
    %c0_137 = arith.constant 0 : index
    %c0_138 = arith.constant 0 : index
    %308 = vector.load %arg4[%c0_137, %c0_138] : memref<4x192xf32, #tpu.memory_space<vmem>>, vector<1x192xf32>
    %309 = arith.addf %307, %308 : vector<1x192xf32>
    %c144_139 = arith.constant 144 : index
    %c0_140 = arith.constant 0 : index
    %310 = vector.load %arg3[%c144_139, %c0_140] : memref<368x192xf32, #tpu.memory_space<vmem>>, vector<64x192xf32>
    %cst_141 = arith.constant dense<0.000000e+00> : vector<1x192xf32>
    %311 = tpu.matmul %240, %310, %cst_141 {dimension_numbers = #tpu.dot_dimension_numbers<[1], [0], [0], [1], [0, 0, 1, 1], [], []>} : vector<1x64xf32>, vector<64x192xf32>, vector<1x192xf32> -> vector<1x192xf32>
    %c1_142 = arith.constant 1 : index
    %c0_143 = arith.constant 0 : index
    %312 = vector.load %arg4[%c1_142, %c0_143] : memref<4x192xf32, #tpu.memory_space<vmem>>, vector<1x192xf32>
    %313 = arith.addf %311, %312 : vector<1x192xf32>
    %314 = vector.extract_strided_slice %309 {offsets = [0, 0], sizes = [1, 64], strides = [1, 1]} : vector<1x192xf32> to vector<1x64xf32>
    %315 = vector.extract_strided_slice %313 {offsets = [0, 0], sizes = [1, 64], strides = [1, 1]} : vector<1x192xf32> to vector<1x64xf32>
    %316 = arith.addf %314, %315 : vector<1x64xf32>
    %317 = arith.negf %316 : vector<1x64xf32>
    %318 = math.exp %317 : vector<1x64xf32>
    %cst_144 = arith.constant 1.000000e+00 : f32
    %319 = vector.broadcast %cst_144 : f32 to vector<1x64xf32>
    %320 = arith.addf %319, %318 : vector<1x64xf32>
    %321 = arith.divf %319, %320 : vector<1x64xf32>
    %322 = vector.extract_strided_slice %309 {offsets = [0, 64], sizes = [1, 64], strides = [1, 1]} : vector<1x192xf32> to vector<1x64xf32>
    %323 = vector.extract_strided_slice %313 {offsets = [0, 64], sizes = [1, 64], strides = [1, 1]} : vector<1x192xf32> to vector<1x64xf32>
    %324 = arith.addf %322, %323 : vector<1x64xf32>
    %325 = arith.negf %324 : vector<1x64xf32>
    %326 = math.exp %325 : vector<1x64xf32>
    %cst_145 = arith.constant 1.000000e+00 : f32
    %327 = vector.broadcast %cst_145 : f32 to vector<1x64xf32>
    %328 = arith.addf %327, %326 : vector<1x64xf32>
    %329 = arith.divf %327, %328 : vector<1x64xf32>
    %330 = vector.extract_strided_slice %309 {offsets = [0, 128], sizes = [1, 64], strides = [1, 1]} : vector<1x192xf32> to vector<1x64xf32>
    %331 = vector.extract_strided_slice %313 {offsets = [0, 128], sizes = [1, 64], strides = [1, 1]} : vector<1x192xf32> to vector<1x64xf32>
    %332 = arith.mulf %321, %331 : vector<1x64xf32>
    %333 = arith.addf %330, %332 : vector<1x64xf32>
    %334 = math.tanh %333 : vector<1x64xf32>
    %cst_146 = arith.constant 1.000000e+00 : f32
    %335 = vector.broadcast %cst_146 : f32 to vector<1x64xf32>
    %336 = arith.subf %335, %329 : vector<1x64xf32>
    %337 = arith.mulf %336, %334 : vector<1x64xf32>
    %338 = arith.mulf %329, %240 : vector<1x64xf32>
    %339 = arith.addf %337, %338 : vector<1x64xf32>
    %c0_147 = arith.constant 0 : index
    %c0_148 = arith.constant 0 : index
    %340 = vector.load %arg5[%c0_147, %c0_148] : memref<96x1xf32, #tpu.memory_space<vmem>>, vector<32x1xf32>
    %cst_149 = arith.constant dense<0.000000e+00> : vector<8x1xf32>
    %341 = tpu.matmul %304, %340, %cst_149 {dimension_numbers = #tpu.dot_dimension_numbers<[1], [0], [0], [1], [0, 0, 1, 1], [], []>} : vector<8x32xf32>, vector<32x1xf32>, vector<8x1xf32> -> vector<8x1xf32>
    %c32_150 = arith.constant 32 : index
    %c0_151 = arith.constant 0 : index
    %342 = vector.load %arg5[%c32_150, %c0_151] : memref<96x1xf32, #tpu.memory_space<vmem>>, vector<64x1xf32>
    %cst_152 = arith.constant dense<0.000000e+00> : vector<1x1xf32>
    %343 = tpu.matmul %339, %342, %cst_152 {dimension_numbers = #tpu.dot_dimension_numbers<[1], [0], [0], [1], [0, 0, 1, 1], [], []>} : vector<1x64xf32>, vector<64x1xf32>, vector<1x1xf32> -> vector<1x1xf32>
    %344 = vector.broadcast %343 : vector<1x1xf32> to vector<8x1xf32>
    %345 = arith.addf %341, %344 : vector<8x1xf32>
    %cst_153 = arith.constant dense<0xFF800000> : vector<1xf32>
    %346 = vector.multi_reduction <maximumf>, %345, %cst_153 [0] : vector<8x1xf32> to vector<1xf32>
    %347 = vector.shape_cast %346 : vector<1xf32> to vector<1x1xf32>
    %348 = vector.broadcast %347 : vector<1x1xf32> to vector<8x1xf32>
    %349 = arith.subf %345, %348 : vector<8x1xf32>
    %350 = math.exp %349 : vector<8x1xf32>
    %cst_154 = arith.constant dense<0.000000e+00> : vector<1xf32>
    %351 = vector.multi_reduction <add>, %350, %cst_154 [0] : vector<8x1xf32> to vector<1xf32>
    %352 = vector.shape_cast %351 : vector<1xf32> to vector<1x1xf32>
    %353 = tpu.reciprocal %352 {approx = true} : vector<1x1xf32> -> vector<1x1xf32>
    %354 = vector.broadcast %353 : vector<1x1xf32> to vector<8x1xf32>
    %355 = arith.mulf %350, %354 : vector<8x1xf32>
    %356 = vector.broadcast %355 : vector<8x1xf32> to vector<8x32xf32>
    %357 = arith.mulf %304, %356 : vector<8x32xf32>
    %cst_155 = arith.constant dense<0.000000e+00> : vector<32xf32>
    %358 = vector.multi_reduction <add>, %357, %cst_155 [0] : vector<8x32xf32> to vector<32xf32>
    %359 = vector.shape_cast %358 : vector<32xf32> to vector<1x32xf32>
    %360 = tpu.concatenate %359, %339 in 1 : vector<1x32xf32>, vector<1x64xf32> -> vector<1x96xf32>
    %c208_156 = arith.constant 208 : index
    %c0_157 = arith.constant 0 : index
    %361 = vector.load %arg3[%c208_156, %c0_157] : memref<368x192xf32, #tpu.memory_space<vmem>>, vector<96x192xf32>
    %cst_158 = arith.constant dense<0.000000e+00> : vector<1x192xf32>
    %362 = tpu.matmul %360, %361, %cst_158 {dimension_numbers = #tpu.dot_dimension_numbers<[1], [0], [0], [1], [0, 0, 1, 1], [], []>} : vector<1x96xf32>, vector<96x192xf32>, vector<1x192xf32> -> vector<1x192xf32>
    %c2_159 = arith.constant 2 : index
    %c0_160 = arith.constant 0 : index
    %363 = vector.load %arg4[%c2_159, %c0_160] : memref<4x192xf32, #tpu.memory_space<vmem>>, vector<1x192xf32>
    %364 = arith.addf %362, %363 : vector<1x192xf32>
    %c304_161 = arith.constant 304 : index
    %c0_162 = arith.constant 0 : index
    %365 = vector.load %arg3[%c304_161, %c0_162] : memref<368x192xf32, #tpu.memory_space<vmem>>, vector<64x192xf32>
    %cst_163 = arith.constant dense<0.000000e+00> : vector<1x192xf32>
    %366 = tpu.matmul %295, %365, %cst_163 {dimension_numbers = #tpu.dot_dimension_numbers<[1], [0], [0], [1], [0, 0, 1, 1], [], []>} : vector<1x64xf32>, vector<64x192xf32>, vector<1x192xf32> -> vector<1x192xf32>
    %c3_164 = arith.constant 3 : index
    %c0_165 = arith.constant 0 : index
    %367 = vector.load %arg4[%c3_164, %c0_165] : memref<4x192xf32, #tpu.memory_space<vmem>>, vector<1x192xf32>
    %368 = arith.addf %366, %367 : vector<1x192xf32>
    %369 = vector.extract_strided_slice %364 {offsets = [0, 0], sizes = [1, 64], strides = [1, 1]} : vector<1x192xf32> to vector<1x64xf32>
    %370 = vector.extract_strided_slice %368 {offsets = [0, 0], sizes = [1, 64], strides = [1, 1]} : vector<1x192xf32> to vector<1x64xf32>
    %371 = arith.addf %369, %370 : vector<1x64xf32>
    %372 = arith.negf %371 : vector<1x64xf32>
    %373 = math.exp %372 : vector<1x64xf32>
    %cst_166 = arith.constant 1.000000e+00 : f32
    %374 = vector.broadcast %cst_166 : f32 to vector<1x64xf32>
    %375 = arith.addf %374, %373 : vector<1x64xf32>
    %376 = arith.divf %374, %375 : vector<1x64xf32>
    %377 = vector.extract_strided_slice %364 {offsets = [0, 64], sizes = [1, 64], strides = [1, 1]} : vector<1x192xf32> to vector<1x64xf32>
    %378 = vector.extract_strided_slice %368 {offsets = [0, 64], sizes = [1, 64], strides = [1, 1]} : vector<1x192xf32> to vector<1x64xf32>
    %379 = arith.addf %377, %378 : vector<1x64xf32>
    %380 = arith.negf %379 : vector<1x64xf32>
    %381 = math.exp %380 : vector<1x64xf32>
    %cst_167 = arith.constant 1.000000e+00 : f32
    %382 = vector.broadcast %cst_167 : f32 to vector<1x64xf32>
    %383 = arith.addf %382, %381 : vector<1x64xf32>
    %384 = arith.divf %382, %383 : vector<1x64xf32>
    %385 = vector.extract_strided_slice %364 {offsets = [0, 128], sizes = [1, 64], strides = [1, 1]} : vector<1x192xf32> to vector<1x64xf32>
    %386 = vector.extract_strided_slice %368 {offsets = [0, 128], sizes = [1, 64], strides = [1, 1]} : vector<1x192xf32> to vector<1x64xf32>
    %387 = arith.mulf %376, %386 : vector<1x64xf32>
    %388 = arith.addf %385, %387 : vector<1x64xf32>
    %389 = math.tanh %388 : vector<1x64xf32>
    %cst_168 = arith.constant 1.000000e+00 : f32
    %390 = vector.broadcast %cst_168 : f32 to vector<1x64xf32>
    %391 = arith.subf %390, %384 : vector<1x64xf32>
    %392 = arith.mulf %391, %389 : vector<1x64xf32>
    %393 = arith.mulf %384, %295 : vector<1x64xf32>
    %394 = arith.addf %392, %393 : vector<1x64xf32>
    %c0_169 = arith.constant 0 : index
    %c0_170 = arith.constant 0 : index
    %395 = vector.load %arg6[%c0_169, %c0_170] : memref<64x48xf32, #tpu.memory_space<vmem>>, vector<64x48xf32>
    %cst_171 = arith.constant dense<0.000000e+00> : vector<1x48xf32>
    %396 = tpu.matmul %394, %395, %cst_171 {dimension_numbers = #tpu.dot_dimension_numbers<[1], [0], [0], [1], [0, 0, 1, 1], [], []>} : vector<1x64xf32>, vector<64x48xf32>, vector<1x48xf32> -> vector<1x48xf32>
    %c0_172 = arith.constant 0 : index
    %c0_173 = arith.constant 0 : index
    %397 = vector.load %arg7[%c0_172, %c0_173] : memref<1x48xf32, #tpu.memory_space<vmem>>, vector<1x48xf32>
    %398 = arith.addf %396, %397 : vector<1x48xf32>
    %399 = tpu.concatenate %101, %200, %299, %398 in 0 : vector<1x48xf32>, vector<1x48xf32>, vector<1x48xf32>, vector<1x48xf32> -> vector<4x48xf32>
    %c0_174 = arith.constant 0 : index
    %c0_175 = arith.constant 0 : index
    %400 = vector.load %arg8[%c0_174, %c0_175] : memref<4x48xf32, #tpu.memory_space<vmem>>, vector<4x48xf32>
    tpu.vector_store %arg8[%c0_174, %c0_175], %399 {strides = array<i32>} : memref<4x48xf32, #tpu.memory_space<vmem>>, vector<4x48xf32>,
    return
  }
  func.func @transform_0(%arg0: i32) -> (i32, i32) {
    %c0_i32 = arith.constant 0 : i32
    %c0_i32_0 = arith.constant 0 : i32
    %c0_i32_1 = arith.constant 0 : i32
    return %c0_i32, %c0_i32_0 : i32, i32
  }
  func.func @transform_1(%arg0: i32) -> (i32, i32, i32) {
    %c0_i32 = arith.constant 0 : i32
    %c0_i32_0 = arith.constant 0 : i32
    %c0_i32_1 = arith.constant 0 : i32
    %c0_i32_2 = arith.constant 0 : i32
    return %c0_i32, %c0_i32_0, %c0_i32_1 : i32, i32, i32
  }
  func.func @transform_2(%arg0: i32) -> (i32, i32) {
    %c0_i32 = arith.constant 0 : i32
    %c0_i32_0 = arith.constant 0 : i32
    %c0_i32_1 = arith.constant 0 : i32
    return %c0_i32, %c0_i32_0 : i32, i32
  }
  func.func @transform_3(%arg0: i32) -> (i32, i32) {
    %c0_i32 = arith.constant 0 : i32
    %c0_i32_0 = arith.constant 0 : i32
    %c0_i32_1 = arith.constant 0 : i32
    return %c0_i32, %c0_i32_0 : i32, i32
  }
  func.func @transform_4(%arg0: i32) -> (i32, i32) {
    %c0_i32 = arith.constant 0 : i32
    %c0_i32_0 = arith.constant 0 : i32
    %c0_i32_1 = arith.constant 0 : i32
    return %c0_i32, %c0_i32_0 : i32, i32
  }
  func.func @transform_5(%arg0: i32) -> (i32, i32) {
    %c0_i32 = arith.constant 0 : i32
    %c0_i32_0 = arith.constant 0 : i32
    %c0_i32_1 = arith.constant 0 : i32
    return %c0_i32, %c0_i32_0 : i32, i32
  }
  func.func @transform_6(%arg0: i32) -> (i32, i32) {
    %c0_i32 = arith.constant 0 : i32
    %c0_i32_0 = arith.constant 0 : i32
    %c0_i32_1 = arith.constant 0 : i32
    return %c0_i32, %c0_i32_0 : i32, i32
  }
  func.func @transform_7(%arg0: i32) -> (i32, i32) {
    %c0_i32 = arith.constant 0 : i32
    %c0_i32_0 = arith.constant 0 : i32
    %c0_i32_1 = arith.constant 0 : i32
    return %c0_i32, %c0_i32_0 : i32, i32
  }
}

</mosaic_0001>

<bundles_post_ra>
// kernel: tpu_custom_call.1
= control target key start
LH: loop header
LB: loop body
LE: loop exit
PB: predicated region body
PF: predicated region fallthrough
CT: control target
= control target key end

     0   :  { %s3564_s28 = smov 64   ;;  %v4660_v5 = vmov 0.0   ;;  %s4652_s0 = inlined_call_operand.vmem [shape: f32[4,32], index: 0, kind: input, shape index: {}]   ;;  %s4653_s1 = inlined_call_operand.vmem [shape: f32[4,8,32], index: 1, kind: input, shape index: {}]   ;;  %s4654_s2 = inlined_call_operand.vmem [shape: f32[368,192], index: 2, kind: input, shape index: {}]   ;;  %s4655_s3 = inlined_call_operand.vmem [shape: f32[4,192], index: 3, kind: input, shape index: {}]   ;;  %s4656_s4 = inlined_call_operand.vmem [shape: f32[96,1], index: 4, kind: input, shape index: {}]   ;;  %s4657_s5 = inlined_call_operand.vmem [shape: f32[64,48], index: 5, kind: input, shape index: {}]   ;;  %s4658_s6 = inlined_call_operand.vmem [shape: f32[1,48], index: 6, kind: input, shape index: {}]   ;;  %s4659_s7 = inlined_call_operand.hbm [shape: f32[4,48], index: 7, kind: output, shape index: {}]  }
   0x1   :  { %v3614_v0 = vld [vmem:[%s4652_s0] sm:$0x1]  ;;  %v43_v1 = vld [vmem:[%s4654_s2 + $0x8] sm:$0xff]  ;;  %v45_v2 = vld [vmem:[%s4654_s2 + $0x18] sm:$0xff]  ;;  %260 = vmatprep.mubr.f32.mxu1 %v4660_v5  ;;  %158 = vmatprep.mubr.f32.mxu0 %v4660_v5 }
   0x2   :  { %35 = vrot.lane.b32.xlu0 %v3614_v0, %s3564_s28  ;;  %v42_v3 = vld [vmem:[%s4654_s2] sm:$0xff]  ;;  %v44_v4 = vld [vmem:[%s4654_s2 + $0x10] sm:$0xff]  ;;  %v3631_v6 = vpack.c.bf16 %v45_v2, %v43_v1  ;;  %v47_v8 = vld [vmem:[%s4654_s2 + $0x28] sm:$0xff] }
   0x3   :  { %v3633_v7 = vpack.c.bf16 %v44_v4, %v42_v3  ;;  %v49_v9 = vld [vmem:[%s4654_s2 + $0x38] sm:$0xff]  ;;  %v46_v10 = vld [vmem:[%s4654_s2 + $0x20] sm:$0xff]  ;;  %v48_v12 = vld [vmem:[%s4654_s2 + $0x30] sm:$0xff] }
   0x4   :  { %4744 = vst [vmem:[#allocation5_spill] sm:$0xff] %v3631_v6  ;;  %v3645_v11 = vpack.c.bf16 %v49_v9, %v47_v8  ;;  %v51_v13 = vld [vmem:[%s4654_s2 + $0x48] sm:$0xff]  ;;  %v53_v14 = vld [vmem:[%s4654_s2 + $0x58] sm:$0xff]  ;;  %2979 = vmatprep.subr.bf16.mxu0 %v3631_v6  ;;  %v3658_v15 = vpack.c.bf16 %v48_v12, %v46_v10  ;;  %v50_v17 = vld [vmem:[%s4654_s2 + $0x40] sm:$0xff] }
   0x5   :  { %2981 = vmatpush1.bf16.msra.mxu0 %v3633_v7  ;;  %v3661_v16 = vpack.c.bf16 %v53_v14, %v51_v13  ;;  %v52_v18 = vld [vmem:[%s4654_s2 + $0x50] sm:$0xff]  ;;  %v55_v19 = vld [vmem:[%s4654_s2 + $0x68] sm:$0xff]  ;;  %v57_v20 = vld [vmem:[%s4654_s2 + $0x78] sm:$0xff] }
   0x6   :  { %2983 = vmatprep.subr.bf16.mxu0 %v3645_v11  ;;  %v166_v21 = vld [vmem:[%s4654_s2 + $0x128] sm:$0xff]  ;;  %v168_v22 = vld [vmem:[%s4654_s2 + $0x138] sm:$0xff]  ;;  %v165_v24 = vld [vmem:[%s4654_s2 + $0x120] sm:$0xff]  ;;  %v3687_v25 = vpack.c.bf16 %v52_v18, %v50_v17  ;;  %v3699_v29 = vpack.c.bf16 %v57_v20, %v55_v19 }
   0x7   :  { %v3681_v23 = vpack.c.bf16 %v168_v22, %v166_v21  ;;  %v54_v26 = vld [vmem:[%s4654_s2 + $0x60] sm:$0xff]  ;;  %v56_v27 = vld [vmem:[%s4654_s2 + $0x70] sm:$0xff]  ;;  %v59_v30 = vld [vmem:[%s4654_s2 + $0x88] sm:$0xff] }
   0x8   :  { %v167_v28 = vld [vmem:[%s4654_s2 + $0x130] sm:$0xff]  ;;  %v170_v32 = vld [vmem:[%s4654_s2 + $0x148] sm:$0xff]  ;;  %v172_v33 = vld [vmem:[%s4654_s2 + $0x158] sm:$0xff]  ;;  %v3731_v40 = vpack.c.bf16 %v56_v27, %v54_v26 }
   0x9   :  { %4745 = vst [vmem:[#allocation6_spill] sm:$0xff] %v3681_v23  ;;  %2985 = vmatpush1.bf16.msra.mxu0 %v3658_v15  ;;  %3015 = vmatprep.subr.bf16.mxu1 %v3681_v23  ;;  %v3705_v31 = vpack.c.bf16 %v167_v28, %v165_v24  ;;  %v61_v34 = vld [vmem:[%s4654_s2 + $0x98] sm:$0xff]  ;;  %v3716_v35 = vpack.c.bf16 %v172_v33, %v170_v32  ;;  %v169_v36 = vld [vmem:[%s4654_s2 + $0x140] sm:$0xff]  ;;  %v171_v37 = vld [vmem:[%s4654_s2 + $0x150] sm:$0xff] }
   0xa   :  { %2987 = vmatprep.subr.bf16.mxu0 %v3661_v16  ;;  %v3725_v38 = vpack.c.bf16 %v171_v37, %v169_v36  ;;  %v174_v39 = vld [vmem:[%s4654_s2 + $0x168] sm:$0xff]  ;;  %v58_v41 = vld [vmem:[%s4654_s2 + $0x80] sm:$0xff]  ;;  %v60_v42 = vld [vmem:[%s4654_s2 + $0x90] sm:$0xff]  ;;  %v3744_v44 = vpack.c.bf16 %v61_v34, %v59_v30 }
   0xb   :  { %3017 = vmatpush1.bf16.msra.mxu1 %v3705_v31  ;;  %v176_v43 = vld [vmem:[%s4654_s2 + $0x178] sm:$0xff]  ;;  %v63_v45 = vld [vmem:[%s4654_s2 + $0xa8] sm:$0xff]  ;;  %v173_v47 = vld [vmem:[%s4654_s2 + $0x160] sm:$0xff]  ;;  %v3770_v53 = vpack.c.bf16 %v60_v42, %v58_v41 }
   0xc   :  { %3019 = vmatprep.subr.bf16.mxu1 %v3716_v35  ;;  %v3749_v46 = vpack.c.bf16 %v176_v43, %v174_v39  ;;  %v175_v48 = vld [vmem:[%s4654_s2 + $0x170] sm:$0xff]  ;;  %v65_v49 = vld [vmem:[%s4654_s2 + $0xb8] sm:$0xff]  ;;  %v178_v50 = vld [vmem:[%s4654_s2 + $0x188] sm:$0xff] }
   0xd   :  { %2989 = vmatpush1.bf16.msra.mxu0 %v3687_v25  ;;  %v180_v51 = vld [vmem:[%s4654_s2 + $0x198] sm:$0xff]  ;;  %v3767_v52 = vpack.c.bf16 %v175_v48, %v173_v47  ;;  %v177_v55 = vld [vmem:[%s4654_s2 + $0x180] sm:$0xff]  ;;  %v179_v56 = vld [vmem:[%s4654_s2 + $0x190] sm:$0xff]  ;;  %v3782_v57 = vpack.c.bf16 %v65_v49, %v63_v45 }
   0xe   :  { %2991 = vmatprep.subr.bf16.mxu0 %v3699_v29  ;;  %v3773_v54 = vpack.c.bf16 %v180_v51, %v178_v50  ;;  %v62_v58 = vld [vmem:[%s4654_s2 + $0xa0] sm:$0xff]  ;;  %v64_v59 = vld [vmem:[%s4654_s2 + $0xb0] sm:$0xff] }
   0xf   :  { %3021 = vmatpush1.bf16.msra.mxu1 %v3725_v38 }
  0x10   :  { %3023 = vmatprep.subr.bf16.mxu1 %v3749_v46 }
  0x11   :  { %2993 = vmatpush1.bf16.msra.mxu0 %v3731_v40 }
  0x12   :  { %2995 = vmatprep.subr.bf16.mxu0 %v3744_v44 }
  0x13   :  { %12 = vsyncpa [#allocation3], 0  ;;  %v67_v60 = vld [vmem:[%s4654_s2 + $0xc8] sm:$0xff]  ;;  %v69_v61 = vld [vmem:[%s4654_s2 + $0xd8] sm:$0xff]  ;;  %3025 = vmatpush1.bf16.msra.mxu1 %v3767_v52  ;;  %v3797_v62 = vpack.c.bf16 %v179_v56, %v177_v55  ;;  %v3800_v63 = vpack.c.bf16 %v64_v59, %v62_v58  ;;  %vm38_vm0 = vcmask 523264   ;;  %vm40_vm1 = vcmask 785408  }
  0x14   :  { %3027 = vmatprep.subr.bf16.mxu1 %v3773_v54  ;;  %v3804_v1 = vpack.c.bf16 %v69_v61, %v67_v60  ;;  %v66_v2 = vld [vmem:[%s4654_s2 + $0xc0] sm:$0xff]  ;;  %v68_v3 = vld [vmem:[%s4654_s2 + $0xd0] sm:$0xff]  ;;  %v71_v4 = vld [vmem:[%s4654_s2 + $0xe8] sm:$0xff]  ;;  %v29_v30 = vlaneseq  ;;  %vm3567_vm2 = vmmov 0   ;;  %s3568_s18 = smov 96   ;;  %vm376_vm3 = vcmask 261120  }
  0x15   :  { %2997 = vmatpush1.bf16.msra.mxu0 %v3770_v53  ;;  %v73_v8 = vld [vmem:[%s4654_s2 + $0xf8] sm:$0xff]  ;;  %v3820_v9 = vpack.c.bf16 %v68_v3, %v66_v2  ;;  %v70_v12 = vld [vmem:[%s4654_s2 + $0xe0] sm:$0xff]  ;;  %v72_v13 = vld [vmem:[%s4654_s2 + $0xf0] sm:$0xff]  ;;  %vm450_vm4 = vcmask 7168   ;;  %vm90_vm5 = vcmask 130048   ;;  %vm2628_vm6 = vcmask 1040384  }
  0x16   :  { %2999 = vmatprep.subr.bf16.mxu0 %v3782_v57  ;;  %4746 = vst [vmem:[#allocation7_spill] sm:$0xff] %v3804_v1  ;;  %v3823_v10 = vpack.c.bf16 %v73_v8, %v71_v4  ;;  %v75_v14 = vld [vmem:[%s4654_s2 + $0x108] sm:$0xff]  ;;  %v77_v17 = vld [vmem:[%s4654_s2 + $0x118] sm:$0xff]  ;;  %v3839_v18 = vpack.c.bf16 %v72_v13, %v70_v12  ;;  %v74_v20 = vld [vmem:[%s4654_s2 + $0x100] sm:$0xff]  ;;  %v30_v32 = vshrl.u32 %v29_v30, 7  ;;  %v4662_v12 = vmov 0.0|0.0  }
  0x17   :  { %3029 = vmatpush1.bf16.msra.mxu1 %v3797_v62  ;;  %4747 = vst [vmem:[#allocation8_spill] sm:$0xff] %v3820_v9  ;;  %v3842_v19 = vpack.c.bf16 %v77_v17, %v75_v14  ;;  %v76_v21 = vld [vmem:[%s4654_s2 + $0x110] sm:$0xff]  ;;  %v2651_v34 = vld [vmem:[%s4655_s3 + $0x1] ss:$4 sm:$0x3]  ;;  %v290_v4 = vld [vmem:[%s4656_s4 + $0x28] sm:$0xff] }
  0x18   :  { %4748 = vst [vmem:[#allocation9_spill] sm:$0xff] %v3823_v10  ;;  %4749 = vst [vmem:[#allocation10_spill] sm:$0xff] %v3839_v18  ;;  %v3851_v22 = vpack.c.bf16 %v76_v21, %v74_v20  ;;  %v3858_v33 = vsub.s32 0, %v30_v32  ;;  %v78_v36 = vld [vmem:[%s4655_s3] ss:$4 sm:$0x3]  ;;  %3030 = vmatprep.subr.bf16.mxu1 %v4662_v12 }
  0x19   :  { %3001 = vmatpush1.bf16.msra.mxu0 %v3800_v63  ;;  %4750 = vst [vmem:[#allocation11_spill] sm:$0xff] %v3842_v19  ;;  %v3874_v51 = vsub.s32 1, %v30_v32  ;;  %v289_v3 = vld [vmem:[%s4656_s4 + $0x20] sm:$0xff]  ;;  %v291_v8 = vld [vmem:[%s4656_s4 + $0x30] sm:$0xff]  ;;  %v292_v14 = vld [vmem:[%s4656_s4 + $0x38] sm:$0xff]  ;;  %vm2630_vm7 = vcmask 1041408  }
  0x1a   :  { %3003 = vmatprep.subr.bf16.mxu0 %v3804_v1  ;;  %261 = vmatmul.mubr.f32.vlgmr.msra.gmra.mrb[0].mxu1 %v4660_v5  ;;  %4751 = vst [vmem:[#allocation12_spill] sm:$0xff] %v3851_v22  ;;  %v3867_v37 = vrot.slane %v2651_v34, %v3858_v33  ;;  %v3870_v39 = vrot.slane %v78_v36, %v3858_v33  ;;  %v293_v20 = vld [vmem:[%s4656_s4 + $0x40] sm:$0xff]  ;;  %v294_v21 = vld [vmem:[%s4656_s4 + $0x48] sm:$0xff]  ;;  %s3570_s27 = smov [#allocation2]   ;;  %vm2632_vm8 = vcmask 1042432   ;;  %vm2634_vm9 = vcmask 388096  }
  0x1b   :  { %v3877_v55 = vrot.slane %v2651_v34, %v3874_v51  ;;  %v3880_v56 = vrot.slane %v78_v36, %v3874_v51  ;;  %v3894_v13 = vpack.c.bf16 %v290_v4, %v289_v3  ;;  %2798 = vmatprep.mubr.msk.f32.mxu1 %vm3567_vm2, %v4660_v5  ;;  %v3902_v17 = vpack.c.bf16 %v292_v14, %v291_v8  ;;  %v490_v3 = vld [vmem:[%s4654_s2 + $0x1b8] sm:$0xff]  ;;  %v487_v4 = vld [vmem:[%s4654_s2 + $0x1a0] sm:$0xff]  ;;  %v489_v14 = vld [vmem:[%s4654_s2 + $0x1b0] sm:$0xff]  ;;  %s2642_s29 = sshll.u32 %s3570_s27, 4  ;;  %s2643_s29 = int_to_ptr.vmem [resolvable:$true] %s2642_s29 }
  0x1c   :  { %4752 = vst [vmem:[#allocation13_spill] sm:$0xff] %v3867_v37  ;;  %4753 = vst [vmem:[#allocation14_spill] sm:$0xff] %v3870_v39  ;;  %p3545_p1 = scmp.lt.s32.totalorder %s2643_s29, %s2643_s29 }
  0x1d   :  { %3005 = vmatpush1.bf16.msra.mxu0 %v3820_v9  ;;  %4754 = vst [vmem:[#allocation15_spill] sm:$0xff] %v3877_v55  ;;  %4755 = vst [vmem:[#allocation16_spill] sm:$0xff] %v3880_v56  ;;  %3032 = vmatpush3.bf16.msra.mxu1 %v3894_v13 }
  0x1e   :  { %3007 = vmatprep.subr.bf16.mxu0 %v3823_v10  ;;  %3033 = vmatprep.subr.bf16.mxu1 %v4662_v12 }
  0x21   :  { %3009 = vmatpush1.bf16.msra.mxu0 %v3839_v18  ;;  %3035 = vmatpush3.bf16.msra.mxu1 %v3902_v17 }
  0x22   :  { %3011 = vmatprep.subr.bf16.mxu0 %v3842_v19  ;;  %3036 = vmatprep.subr.bf16.mxu1 %v4662_v12 }
  0x25   :  { %3013 = vmatpush1.bf16.msra.mxu0 %v3851_v22 }
  0x74   :  { %v36_v24 = vpop.permute.xlu0 %35 }
  0x75   :  { %v39_v26 = vsel %vm38_vm0, 0.0, %v36_v24  ;;  %v3912_v24 = vpack.c.bf16 %v294_v21, %v293_v20  ;;  %v492_v20 = vld [vmem:[%s4654_s2 + $0x1c8] sm:$0xff]  ;;  %v494_v21 = vld [vmem:[%s4654_s2 + $0x1d8] sm:$0xff] }
  0x76   :  { %2650 = vmatmul.mubr.msk.f32.vlgmr.msra.gmra.mrb[0].mxu0 %vm40_vm1, %v39_v26 }
  0x77   :  { %591 = vmatprep.mubr.f32.mxu0 %v4660_v5  ;;  %3038 = vmatpush3.bf16.msra.mxu1 %v3912_v24 }
  0x78   :  { %3039 = vmatprep.subr.bf16.mxu1 %v4662_v12 }
  0xed   :  { %v262_v27 = vpop.f32.mrb[0].mxu1 }
  0xee   :  { %v264_v28 = vpop.f32.mrb[1].mxu1  ;;  %v263_v41 = vadd.f32 %v262_v27, %v3867_v37  ;;  %v295_v27 = vld [vmem:[%s4656_s4 + $0x50] sm:$0xff] }
  0xef   :  { %v265_v58 = vadd.f32 %v264_v28, %v3877_v55  ;;  %v296_v28 = vld [vmem:[%s4656_s4 + $0x58] sm:$0xff] }
  0xf0   :  { %v3923_v30 = vpack.c.bf16 %v296_v28, %v295_v27  ;;  %v3991_v27 = vpack.c.bf16 %v494_v21, %v492_v20  ;;  %v491_v28 = vld [vmem:[%s4654_s2 + $0x1c0] sm:$0xff] }
  0xf2   :  { %3041 = vmatpush3.bf16.msra.mxu1 %v3923_v30  ;;  %4758 = vst [vmem:[#allocation19_spill] sm:$0xff] %v3991_v27 }
  0xf3   :  { %3042 = vmatprep.subr.bf16.mxu1 %v4662_v12 }
 0x149   :  { %v160_v42 = vpop.f32.mrb[0].mxu0 }
 0x14a   :  { %v161_v43 = vadd.f32 %v160_v42, %v3870_v39  ;;  %v162_v45 = vpop.f32.mrb[1].mxu0 }
 0x14b   :  { %v163_v61 = vadd.f32 %v162_v45, %v3880_v56  ;;  %v286_v45 = vld [vmem:[%s4656_s4 + $0x8] sm:$0xff] }
 0x14c   :  { %v267_v47 = vadd.f32 %v263_v41, %v161_v43  ;;  %v285_v43 = vld [vmem:[%s4656_s4] sm:$0xff] }
 0x14e   :  { %v2652_v48 = vmul.f32 -1.442695, %v267_v47  ;;  %v3940_v47 = vpack.c.bf16 %v286_v45, %v285_v43 }
 0x150   :  { %3475 = vpow2.f32 %v2652_v48  ;;  %v287_v48 = vld [vmem:[%s4656_s4 + $0x10] sm:$0xff] }
 0x15a   :  { %v3476_v49 = vpop.eup %3475 }
 0x15b   :  { %v271_v50 = vadd.f32 1.0, %v3476_v49  ;;  %v288_v49 = vld [vmem:[%s4656_s4 + $0x18] sm:$0xff] }
 0x15d   :  { %3477 = vrcp.f32 %v271_v50 }
 0x167   :  { %v3478_v59 = vpop.eup %3477 }
 0x168   :  { %v274_v60 = vmul.f32 %v3478_v59, %v265_v58  ;;  %v277_v32 = vsub.f32 1.0, %v3478_v59  ;;  %v283_v36 = vmul.f32 0.0, %v3478_v59  ;;  %v32_v58 = vrot.slane %v3614_v0, %v3858_v33  ;;  %v28_v59 = vld [vmem:[%s4653_s1] sm:$0xff] }
 0x169   :  { %v3569_v0 = vmov 0  }
 0x16a   :  { %v275_v2 = vadd.f32 %v274_v60, %v163_v61  ;;  %v3958_v60 = vpack.c.bf16 %v288_v49, %v287_v48  ;;  %v3963_v61 = vadd.f32 %v32_v58, %v28_v59  ;;  %3473 = vset.pattern.permute.xlu1 %v3569_v0  ;;  %3474 = vset.pattern.permute.xlu0 %v3569_v0 }
 0x16c   :  { %3479 = vtanh.f32 %v275_v2  ;;  %v488_v2 = vld [vmem:[%s4654_s2 + $0x1a8] sm:$0xff] }
 0x16d   :  { %v3978_v8 = vpack.c.bf16 %v490_v3, %v488_v2 }
 0x16f   :  { %3049 = vmatprep.subr.bf16.mxu0 %v3978_v8 }
 0x176   :  { %v3480_v26 = vpop.eup %3479 }
 0x177   :  { %279 = vrot.lane.b32.xlu0 %v3480_v26, %s3564_s28  ;;  %v3989_v26 = vpack.c.bf16 %v489_v14, %v487_v4 }
 0x179   :  { %4757 = vst [vmem:[#allocation18_spill] sm:$0xff] %v3989_v26  ;;  %3051 = vmatpush1.bf16.msra.mxu0 %v3989_v26 }
 0x17a   :  { %3053 = vmatprep.subr.bf16.mxu0 %v3991_v27 }
 0x1e9   :  { %v280_v34 = vpop.permute.xlu0 %279 }
 0x1ea   :  { %v282_v41 = vmul.f32 %v280_v34, %v277_v32  ;;  %v493_v32 = vld [vmem:[%s4654_s2 + $0x1d0] sm:$0xff]  ;;  %v599_v34 = vld [vmem:[%s4654_s2 + $0x268] sm:$0xff] }
 0x1ec   :  { %v3928_v42 = vadd.f32 %v283_v36, %v282_v41  ;;  %v601_v36 = vld [vmem:[%s4654_s2 + $0x278] sm:$0xff]  ;;  %v4007_v41 = vpack.c.bf16 %v493_v32, %v491_v28 }
 0x1ed   :  { %v4009_v43 = vpack.c.bf16 %v601_v36, %v599_v34 }
 0x1ee   :  { %4756 = vst [vmem:[#allocation17_spill] sm:$0xff] %v3928_v42  ;;  %483 = vrot.lane.b32.xlu0 %v3928_v42, %s3568_s18  ;;  %298 = vrot.lane.b32.xlu1 %v3928_v42, %s3564_s28  ;;  %4759 = vst [vmem:[#allocation20_spill] sm:$0xff] %v4007_v41 }
 0x1ef   :  { %4760 = vst [vmem:[#allocation21_spill] sm:$0xff] %v4009_v43  ;;  %3055 = vmatpush1.bf16.msra.mxu0 %v4007_v41 }
 0x260   :  { %v3948_v50 = vpop.permute.xlu1 %298  ;;  %v484_v56 = vpop.permute.xlu0 %483 }
 0x261   :  { %2799 = vmatmul.mubr.msk.f32.vlgmr.msra.gmra.mrb[2].mxu1 %vm38_vm0, %v3948_v50 }
 0x262   :  { %3044 = vmatpush3.bf16.msra.mxu1 %v3940_v47  ;;  %2809 = vmatprep.mubr.msk.f32.mxu1 %vm3567_vm2, %v4660_v5 }
 0x263   :  { %3045 = vmatprep.subr.bf16.mxu1 %v4662_v12 }
 0x266   :  { %3047 = vmatpush3.bf16.msra.mxu1 %v3958_v60 }
 0x267   :  { %3073 = vmatprep.subr.bf16.mxu1 %v4009_v43 }
 0x269   :  { %2810 = vmatmul.mubr.msk.f32.vlgmr.msra.gmra.mrb[4].mxu1 %vm376_vm3, %v3963_v61 }
 0x26a   :  { %691 = vmatprep.mubr.f32.mxu1 %v4660_v5 }
 0x334   :  { %v368_v45 = vpop.f32.mrb[2].mxu1 }
 0x335   :  { %v2800_v48 = vpop.f32.mrb[3].mxu1  ;;  %v375_v49 = vrot.slane %v368_v45, %v3858_v33 }
 0x33c   :  { %v446_v58 = vpop.f32.mrb[4].mxu1 }
 0x33d   :  { %v447_v59 = vadd.f32 %v446_v58, %v375_v49  ;;  %v2811_v0 = vpop.f32.mrb[5].mxu1 }
 0x33f   :  { %v451_v2 = vsel %vm450_vm4, %v447_v59, -inf }
 0x340   :  { %v452_v3 = vrot.slane %v451_v2, 4 }
 0x342   :  { %v453_v4 = vmax.f32 %v451_v2, %v452_v3  ;;  %v496_v2 = vld [vmem:[%s4654_s2 + $0x1e8] sm:$0xff]  ;;  %v598_v3 = vld [vmem:[%s4654_s2 + $0x260] sm:$0xff] }
 0x344   :  { %v454_v14 = vrot.slane %v453_v4, 2 }
 0x346   :  { %v455_v20 = vmax.f32 %v453_v4, %v454_v14  ;;  %v497_v14 = vld [vmem:[%s4654_s2 + $0x1f0] sm:$0xff] }
 0x348   :  { %v456_v21 = vrot.slane %v455_v20, 1 }
 0x34a   :  { %v457_v28 = vmax.f32 %v455_v20, %v456_v21 }
 0x34c   :  { %v458_v32 = vsub.f32 %v447_v59, %v457_v28  ;;  %v498_v59 = vld [vmem:[%s4654_s2 + $0x1f8] sm:$0xff]  ;;  %v603_v28 = vld [vmem:[%s4654_s2 + $0x288] sm:$0xff] }
 0x34e   :  { %v459_v34 = vmul.f32 1.442695, %v458_v32  ;;  %v605_v32 = vld [vmem:[%s4654_s2 + $0x298] sm:$0xff] }
 0x350   :  { %3481 = vpow2.f32 %v459_v34  ;;  %v4050_v34 = vpack.c.bf16 %v605_v32, %v603_v28  ;;  %v506_v28 = vld [vmem:[%s4654_s2 + $0x238] sm:$0xff]  ;;  %v606_v32 = vld [vmem:[%s4654_s2 + $0x2a0] sm:$0xff] }
 0x352   :  { %4764 = vst [vmem:[#allocation25_spill] sm:$0xff] %v4050_v34 }
 0x35a   :  { %v3482_v36 = vpop.eup %3481 }
 0x35b   :  { %v461_v48 = vsel %vm450_vm4, %v3482_v36, 0.0 }
 0x35c   :  { %v462_v5 = vrot.slane %v461_v48, 4 }
 0x35e   :  { %v463_v45 = vadd.f32 %v462_v5, %v461_v48  ;;  %v4026_v5 = vpack.c.bf16 %v498_v59, %v496_v2  ;;  %v502_v48 = vld [vmem:[%s4654_s2 + $0x218] sm:$0xff]  ;;  %v501_v2 = vld [vmem:[%s4654_s2 + $0x210] sm:$0xff] }
 0x360   :  { %v464_v12 = vrot.slane %v463_v45, 2  ;;  %4761 = vst [vmem:[#allocation22_spill] sm:$0xff] %v4026_v5  ;;  %3057 = vmatprep.subr.bf16.mxu0 %v4026_v5 }
 0x362   :  { %v465_v42 = vadd.f32 %v464_v12, %v463_v45  ;;  %v600_v12 = vld [vmem:[%s4654_s2 + $0x270] sm:$0xff]  ;;  %v602_v45 = vld [vmem:[%s4654_s2 + $0x280] sm:$0xff] }
 0x363   :  { %v4037_v20 = vpack.c.bf16 %v600_v12, %v598_v3  ;;  %v609_v12 = vld [vmem:[%s4654_s2 + $0x2b8] sm:$0xff] }
 0x364   :  { %v466_v49 = vrot.slane %v465_v42, 1 }
 0x365   :  { %4762 = vst [vmem:[#allocation23_spill] sm:$0xff] %v4037_v20  ;;  %3075 = vmatpush1.bf16.msra.mxu1 %v4037_v20 }
 0x366   :  { %v467_v58 = vadd.f32 %v466_v49, %v465_v42  ;;  %v495_v42 = vld [vmem:[%s4654_s2 + $0x1e0] sm:$0xff]  ;;  %3077 = vmatprep.subr.bf16.mxu1 %v4050_v34 }
 0x367   :  { %v4039_v21 = vpack.c.bf16 %v497_v14, %v495_v42  ;;  %v504_v14 = vld [vmem:[%s4654_s2 + $0x228] sm:$0xff] }
 0x368   :  { %3483 = vrcp.f32 %v467_v58  ;;  %v604_v58 = vld [vmem:[%s4654_s2 + $0x290] sm:$0xff] }
 0x369   :  { %4763 = vst [vmem:[#allocation24_spill] sm:$0xff] %v4039_v21  ;;  %3059 = vmatpush1.bf16.msra.mxu0 %v4039_v21  ;;  %v4073_v59 = vpack.c.bf16 %v604_v58, %v602_v45  ;;  %v503_v45 = vld [vmem:[%s4654_s2 + $0x220] sm:$0xff]  ;;  %v505_v58 = vld [vmem:[%s4654_s2 + $0x230] sm:$0xff] }
 0x36b   :  { %4766 = vst [vmem:[#allocation27_spill] sm:$0xff] %v4073_v59  ;;  %3079 = vmatpush1.bf16.msra.mxu1 %v4073_v59 }
 0x372   :  { %v3484_v0 = vpop.eup %3483 }
 0x373   :  { %v469_v4 = vmul.f32 %v3484_v0, %v3482_v36  ;;  %v500_v36 = vld [vmem:[%s4654_s2 + $0x208] sm:$0xff]  ;;  %v499_v0 = vld [vmem:[%s4654_s2 + $0x200] sm:$0xff] }
 0x374   :  { %v4061_v49 = vpack.c.bf16 %v502_v48, %v500_v36  ;;  %v4075_v3 = vpack.c.bf16 %v501_v2, %v499_v0  ;;  %v4097_v36 = vpack.c.bf16 %v506_v28, %v504_v14  ;;  %v608_v48 = vld [vmem:[%s4654_s2 + $0x2b0] sm:$0xff]  ;;  %v4111_v2 = vpack.c.bf16 %v505_v58, %v503_v45  ;;  %v508_v28 = vld [vmem:[%s4654_s2 + $0x248] sm:$0xff] }
 0x375   :  { %472 = vperm.xlu1 %3473, %v469_v4   ;;  %v607_v4 = vld [vmem:[%s4654_s2 + $0x2a8] sm:$0xff]  ;;  %v4109_v0 = vpack.c.bf16 %v608_v48, %v606_v32  ;;  %v510_v32 = vld [vmem:[%s4654_s2 + $0x258] sm:$0xff]  ;;  %v610_v48 = vld [vmem:[%s4654_s2 + $0x2c0] sm:$0xff] }
 0x376   :  { %4765 = vst [vmem:[#allocation26_spill] sm:$0xff] %v4061_v49  ;;  %4767 = vst [vmem:[#allocation28_spill] sm:$0xff] %v4075_v3  ;;  %3061 = vmatprep.subr.bf16.mxu0 %v4061_v49  ;;  %v4086_v42 = vpack.c.bf16 %v609_v12, %v607_v4  ;;  %v611_v4 = vld [vmem:[%s4654_s2 + $0x2c8] sm:$0xff]  ;;  %v613_v12 = vld [vmem:[%s4654_s2 + $0x2d8] sm:$0xff]  ;;  %v4133_v45 = vpack.c.bf16 %v510_v32, %v508_v28  ;;  %v4776_v28 = vmov 0.0|0.0   ;;  %v4777_v32 = vmov 0.0  }
 0x377   :  { %3063 = vmatpush1.bf16.msra.mxu0 %v4075_v3  ;;  %4769 = vst [vmem:[#allocation30_spill] sm:$0xff] %v4097_v36  ;;  %4770 = vst [vmem:[#allocation31_spill] sm:$0xff] %v4109_v0  ;;  %v4122_v14 = vpack.c.bf16 %v613_v12, %v611_v4  ;;  %v612_v58 = vld [vmem:[%s4654_s2 + $0x2d0] sm:$0xff]  ;;  %v507_v4 = vld [vmem:[%s4654_s2 + $0x240] sm:$0xff] }
 0x378   :  { %4768 = vst [vmem:[#allocation29_spill] sm:$0xff] %v4086_v42  ;;  %3081 = vmatprep.subr.bf16.mxu1 %v4086_v42  ;;  %4771 = vst [vmem:[#allocation32_spill] sm:$0xff] %v4111_v2  ;;  %3065 = vmatprep.subr.bf16.mxu0 %v4097_v36  ;;  %v509_v12 = vld [vmem:[%s4654_s2 + $0x250] sm:$0xff] }
 0x379   :  { %3083 = vmatpush1.bf16.msra.mxu1 %v4109_v0  ;;  %4772 = vst [vmem:[#allocation33_spill] sm:$0xff] %v4122_v14  ;;  %4773 = vst [vmem:[#allocation34_spill] sm:$0xff] %v4133_v45  ;;  %v4145_v0 = vpack.c.bf16 %v612_v58, %v610_v48  ;;  %v4147_v42 = vpack.c.bf16 %v509_v12, %v507_v4 }
 0x37a   :  { %3085 = vmatprep.subr.bf16.mxu1 %v4122_v14 }
 0x37b   :  { %3067 = vmatpush1.bf16.msra.mxu0 %v4111_v2  ;;  %4774 = vst [vmem:[#allocation35_spill] sm:$0xff] %v4145_v0  ;;  %4775 = vst [vmem:[#allocation36_spill] sm:$0xff] %v4147_v42 }
 0x37c   :  { %3069 = vmatprep.subr.bf16.mxu0 %v4133_v45 }
 0x37d   :  { %3087 = vmatpush1.bf16.msra.mxu1 %v4145_v0 }
 0x37e   :  { %3088 = vmatprep.subr.bf16.mxu1 %v4776_v28 }
 0x37f   :  { %3071 = vmatpush1.bf16.msra.mxu0 %v4147_v42 }
 0x380   :  { %3101 = vmatprep.subr.bf16.mxu0 %v3631_v6  ;;  %692 = vmatmul.mubr.f32.vlgmr.msra.gmra.mrb[6].mxu1 %v4777_v32 }
 0x381   :  { %2828 = vmatprep.mubr.msk.f32.mxu1 %vm3567_vm2, %v4777_v32 }
 0x3f4   :  { %v473_v14 = vpop.permute.xlu1 %472 }
 0x3f5   :  { %v475_v48 = vmul.f32 %v473_v14, %v3963_v61  ;;  %v2657_v61 = vld [vmem:[%s4655_s3 + $0x3] ss:$4 sm:$0x3] }
 0x3f7   :  { %v476_v58 = vsel %vm376_vm3, %v475_v48, 0.0 }
 0x3f8   :  { %v477_v4 = vrot.slane %v476_v58, 4 }
 0x3fa   :  { %v478_v12 = vadd.f32 %v477_v4, %v476_v58 }
 0x3fc   :  { %v479_v59 = vrot.slane %v478_v12, 2 }
 0x3fe   :  { %v480_v0 = vadd.f32 %v479_v59, %v478_v12 }
 0x400   :  { %v481_v34 = vrot.slane %v480_v0, 1 }
 0x402   :  { %v482_v20 = vadd.f32 %v481_v34, %v480_v0  ;;  %v4186_v34 = vrot.slane %v2657_v61, %v3858_v33 }
 0x404   :  { %v486_v55 = vsel %vm376_vm3, %v482_v20, %v484_v56  ;;  %v2655_v20 = vld [vmem:[%s4655_s3 + $0x2] ss:$4 sm:$0x3]  ;;  %4778 = vst [vmem:[#allocation37_spill] sm:$0xff] %v4186_v34 }
 0x405   :  { %2656 = vmatmul.mubr.msk.f32.vlgmr.msra.gmra.mrb[2].mxu0 %vm40_vm1, %v486_v55  ;;  %v4189_v59 = vrot.slane %v2655_v20, %v3858_v33 }
 0x406   :  { %3103 = vmatpush1.bf16.msra.mxu0 %v3633_v7 }
 0x407   :  { %3105 = vmatprep.subr.bf16.mxu0 %v3645_v11 }
 0x40a   :  { %3107 = vmatpush1.bf16.msra.mxu0 %v3658_v15 }
 0x40b   :  { %3109 = vmatprep.subr.bf16.mxu0 %v3661_v16 }
 0x40e   :  { %3111 = vmatpush1.bf16.msra.mxu0 %v3687_v25 }
 0x40f   :  { %3113 = vmatprep.subr.bf16.mxu0 %v3699_v29 }
 0x412   :  { %3115 = vmatpush1.bf16.msra.mxu0 %v3731_v40 }
 0x413   :  { %3117 = vmatprep.subr.bf16.mxu0 %v3744_v44 }
 0x416   :  { %3119 = vmatpush1.bf16.msra.mxu0 %v3770_v53 }
 0x417   :  { %3121 = vmatprep.subr.bf16.mxu0 %v3782_v57 }
 0x41a   :  { %3123 = vmatpush1.bf16.msra.mxu0 %v3800_v63 }
 0x41b   :  { %3125 = vmatprep.subr.bf16.mxu0 %v3804_v1 }
 0x41e   :  { %3127 = vmatpush1.bf16.msra.mxu0 %v3820_v9 }
 0x41f   :  { %3129 = vmatprep.subr.bf16.mxu0 %v3823_v10  ;;  %v4197_v10 = vrot.slane %v2655_v20, %v3874_v51  ;;  %v721_v20 = vld [vmem:[%s4657_s5 + $0x28] sm:$0xff] }
 0x422   :  { %3131 = vmatpush1.bf16.msra.mxu0 %v3839_v18  ;;  %v4194_v18 = vrot.slane %v2657_v61, %v3874_v51  ;;  %v720_v61 = vld [vmem:[%s4657_s5 + $0x20] sm:$0xff] }
 0x423   :  { %3133 = vmatprep.subr.bf16.mxu0 %v3842_v19 }
 0x426   :  { %3135 = vmatpush1.bf16.msra.mxu0 %v3851_v22 }
 0x427   :  { %3164 = vmatprep.subr.bf16.mxu0 %v4776_v28 }
 0x453   :  { %v693_v55 = vpop.f32.mrb[6].mxu1 }
 0x454   :  { %v695_v56 = vpop.f32.mrb[7].mxu1  ;;  %v694_v0 = vadd.f32 %v693_v55, %v4186_v34 }
 0x455   :  { %v696_v9 = vadd.f32 %v695_v56, %v4194_v18 }
 0x4d8   :  { %v593_v14 = vpop.f32.mrb[2].mxu0 }
 0x4d9   :  { %v594_v48 = vadd.f32 %v593_v14, %v4189_v59  ;;  %v595_v58 = vpop.f32.mrb[3].mxu0 }
 0x4da   :  { %v596_v34 = vadd.f32 %v595_v58, %v4197_v10  ;;  %v722_v58 = vld [vmem:[%s4657_s5 + $0x30] sm:$0xff] }
 0x4db   :  { %v698_v4 = vadd.f32 %v694_v0, %v594_v48  ;;  %v716_v0 = vld [vmem:[%s4657_s5] sm:$0xff] }
 0x4dd   :  { %v2658_v12 = vmul.f32 -1.442695, %v698_v4  ;;  %v723_v4 = vld [vmem:[%s4657_s5 + $0x38] sm:$0xff] }
 0x4df   :  { %3485 = vpow2.f32 %v2658_v12  ;;  %v800_v12 = vld [vmem:[%s4652_s0 + $0x1] sm:$0x1] }
 0x4e9   :  { %v3486_v22 = vpop.eup %3485 }
 0x4ea   :  { %v702_v19 = vadd.f32 1.0, %v3486_v22  ;;  %v718_v22 = vld [vmem:[%s4657_s5 + $0x10] sm:$0xff] }
 0x4ec   :  { %3487 = vrcp.f32 %v702_v19  ;;  %v717_v19 = vld [vmem:[%s4657_s5 + $0x8] sm:$0xff] }
 0x4ed   :  { %v4210_v51 = vpack.c.bf16 %v717_v19, %v716_v0 }
 0x4ef   :  { %4779 = vst [vmem:[#allocation38_spill] sm:$0xff] %v4210_v51  ;;  %3090 = vmatpush3.bf16.msra.mxu1 %v4210_v51 }
 0x4f0   :  { %3091 = vmatprep.subr.bf16.mxu1 %v4776_v28 }
 0x4f6   :  { %v3488_v1 = vpop.eup %3487 }
 0x4f7   :  { %v705_v55 = vmul.f32 %v3488_v1, %v696_v9  ;;  %v719_v9 = vld [vmem:[%s4657_s5 + $0x18] sm:$0xff]  ;;  %v714_v19 = vmul.f32 0.0, %v3488_v1 }
 0x4f8   :  { %v4216_v56 = vpack.c.bf16 %v719_v9, %v718_v22 }
 0x4f9   :  { %v706_v14 = vadd.f32 %v705_v55, %v596_v34  ;;  %v4226_v34 = vpack.c.bf16 %v721_v20, %v720_v61  ;;  %v4240_v55 = vpack.c.bf16 %v723_v4, %v722_v58 }
 0x4fa   :  { %4780 = vst [vmem:[#allocation39_spill] sm:$0xff] %v4216_v56  ;;  %3093 = vmatpush3.bf16.msra.mxu1 %v4216_v56 }
 0x4fb   :  { %3489 = vtanh.f32 %v706_v14  ;;  %4781 = vst [vmem:[#allocation40_spill] sm:$0xff] %v4226_v34  ;;  %3094 = vmatprep.subr.bf16.mxu1 %v4776_v28  ;;  %4782 = vst [vmem:[#allocation41_spill] sm:$0xff] %v4240_v55  ;;  %v708_v14 = vsub.f32 1.0, %v3488_v1  ;;  %v4278_v1 = vld [vmem:[%s4658_s6] sm:$0x1] }
 0x4fe   :  { %3096 = vmatpush3.bf16.msra.mxu1 %v4226_v34 }
 0x4ff   :  { %3097 = vmatprep.subr.bf16.mxu1 %v4776_v28 }
 0x502   :  { %3099 = vmatpush3.bf16.msra.mxu1 %v4240_v55 }
 0x503   :  { %3137 = vmatprep.subr.bf16.mxu1 %v3681_v23 }
 0x505   :  { %v3490_v48 = vpop.eup %3489 }
 0x506   :  { %710 = vrot.lane.b32.xlu1 %v3490_v48, %s3564_s28 }
 0x50a   :  { %810 = vrot.lane.b32.xlu1 %v800_v12, %s3564_s28 }
 0x578   :  { %v711_v0 = vpop.permute.xlu1 %710 }
 0x579   :  { %v713_v22 = vmul.f32 %v711_v0, %v708_v14 }
 0x57b   :  { %v4246_v9 = vadd.f32 %v714_v19, %v713_v22 }
 0x57c   :  { %v811_v14 = vpop.permute.xlu1 %810 }
 0x57d   :  { %726 = vrot.lane.b32.xlu0 %v4246_v9, %s3564_s28 }
 0x5ef   :  { %v4250_v61 = vpop.permute.xlu0 %726 }
 0x5f0   :  { %2829 = vmatmul.mubr.msk.f32.vlgmr.msra.gmra.mrb[8].mxu1 %vm38_vm0, %v4250_v61  ;;  %v817_v0 = vsel %vm38_vm0, %v4250_v61, %v811_v14 }
 0x5f1   :  { %3139 = vmatpush1.bf16.msra.mxu1 %v3705_v31  ;;  %956 = vmatprep.mubr.f32.mxu1 %v4777_v32 }
 0x5f2   :  { %3141 = vmatprep.subr.bf16.mxu1 %v3716_v35 }
 0x5f5   :  { %3143 = vmatpush1.bf16.msra.mxu1 %v3725_v38 }
 0x5f6   :  { %3145 = vmatprep.subr.bf16.mxu1 %v3749_v46 }
 0x5f9   :  { %3147 = vmatpush1.bf16.msra.mxu1 %v3767_v52 }
 0x5fa   :  { %3149 = vmatprep.subr.bf16.mxu1 %v3773_v54 }
 0x5fd   :  { %3151 = vmatpush1.bf16.msra.mxu1 %v3797_v62 }
 0x5fe   :  { %3152 = vmatprep.subr.bf16.mxu1 %v4776_v28 }
 0x600   :  { %2662 = vmatmul.mubr.msk.f32.vlgmr.msra.gmra.mrb[10].mxu1 %vm38_vm0, %v3948_v50 }
 0x601   :  { %3154 = vmatpush3.bf16.msra.mxu1 %v3894_v13  ;;  %2847 = vmatprep.mubr.msk.f32.mxu1 %vm3567_vm2, %v4777_v32 }
 0x602   :  { %3155 = vmatprep.subr.bf16.mxu1 %v4776_v28 }
 0x605   :  { %3157 = vmatpush3.bf16.msra.mxu1 %v3902_v17 }
 0x606   :  { %3158 = vmatprep.subr.bf16.mxu1 %v4776_v28 }
 0x609   :  { %3160 = vmatpush3.bf16.msra.mxu1 %v3912_v24 }
 0x60a   :  { %3161 = vmatprep.subr.bf16.mxu1 %v4776_v28 }
 0x60d   :  { %3163 = vmatpush3.bf16.msra.mxu1 %v3923_v30 }
 0x60e   :  { %3195 = vmatprep.subr.bf16.mxu1 %v4009_v43  ;;  %v806_v43 = vrot.slane %v800_v12, %v3858_v33 }
 0x6c3   :  { %v796_v50 = vpop.f32.mrb[8].mxu1 }
 0x6c4   :  { %v4281_v20 = vadd.f32 %v796_v50, %v4278_v1  ;;  %v2830_v48 = vpop.f32.mrb[9].mxu1  ;;  %v2660_v50 = vld [vmem:[%s4653_s1 + $0x8] sm:$0xff] }
 0x6c5   :  { %v4297_v48 = vadd.f32 %v2660_v50, %v806_v43 }
 0x6c6   :  { %4783 = vst [vmem:[#allocation42_spill] sm:$0xff] %v4281_v20  ;;  %814 = vrot.lane.b32.xlu0 %v4281_v20, %s3568_s18 }
 0x6d3   :  { %v958_v58 = vpop.f32.mrb[10].mxu1 }
 0x6d4   :  { %v960_v4 = vpop.f32.mrb[11].mxu1  ;;  %v959_v12 = vadd.f32 %v958_v58, %v3867_v37 }
 0x738   :  { %v815_v19 = vpop.permute.xlu0 %814 }
 0x739   :  { %v818_v22 = vsel %vm40_vm1, %v817_v0, %v815_v19  ;;  %2661 = vmatprep.mubr.msk.f32.mxu0 %vm90_vm5, %v815_v19 }
 0x73a   :  { %886 = vmatmul.mubr.f32.vlgmr.msra.gmra.mrb[4].mxu0 %v818_v22 }
 0x73b   :  { %3166 = vmatpush3.bf16.msra.mxu0 %v3940_v47  ;;  %2858 = vmatprep.mubr.msk.f32.mxu0 %vm3567_vm2, %v4777_v32 }
 0x73c   :  { %3167 = vmatprep.subr.bf16.mxu0 %v4776_v28 }
 0x73f   :  { %3169 = vmatpush3.bf16.msra.mxu0 %v3958_v60 }
 0x740   :  { %3171 = vmatprep.subr.bf16.mxu0 %v3978_v8 }
 0x742   :  { %2859 = vmatmul.mubr.msk.f32.vlgmr.msra.gmra.mrb[6].mxu0 %vm376_vm3, %v4297_v48 }
 0x743   :  { %3173 = vmatpush1.bf16.msra.mxu0 %v3989_v26  ;;  %1236 = vmatprep.mubr.f32.mxu0 %v4777_v32 }
 0x744   :  { %3175 = vmatprep.subr.bf16.mxu0 %v3991_v27 }
 0x747   :  { %3177 = vmatpush1.bf16.msra.mxu0 %v4007_v41 }
 0x748   :  { %3179 = vmatprep.subr.bf16.mxu0 %v4026_v5  ;;  %v4786_v5 = vld [vmem:[#allocation17_spill] sm:$0xff] }
 0x74b   :  { %3181 = vmatpush1.bf16.msra.mxu0 %v4039_v21 }
 0x74c   :  { %3183 = vmatprep.subr.bf16.mxu0 %v4061_v49 }
 0x74f   :  { %3185 = vmatpush1.bf16.msra.mxu0 %v4075_v3 }
 0x750   :  { %3187 = vmatprep.subr.bf16.mxu0 %v4097_v36  ;;  %v4784_v36 = vld [vmem:[#allocation15_spill] sm:$0xff] }
 0x753   :  { %3189 = vmatpush1.bf16.msra.mxu0 %v4111_v2  ;;  %v961_v2 = vadd.f32 %v960_v4, %v4784_v36 }
 0x754   :  { %3191 = vmatprep.subr.bf16.mxu0 %v4133_v45  ;;  %v4785_v45 = vld [vmem:[#allocation16_spill] sm:$0xff] }
 0x757   :  { %3193 = vmatpush1.bf16.msra.mxu0 %v4147_v42 }
 0x758   :  { %3223 = vmatprep.subr.bf16.mxu0 %v3631_v6 }
 0x80d   :  { %v887_v43 = vpop.f32.mrb[4].mxu0 }
 0x80e   :  { %v888_v14 = vadd.f32 %v887_v43, %v3870_v39  ;;  %v889_v0 = vpop.f32.mrb[5].mxu0 }
 0x80f   :  { %v890_v49 = vadd.f32 %v889_v0, %v4785_v45 }
 0x810   :  { %v963_v19 = vadd.f32 %v959_v12, %v888_v14 }
 0x812   :  { %v2663_v22 = vmul.f32 -1.442695, %v963_v19 }
 0x814   :  { %3491 = vpow2.f32 %v2663_v22 }
 0x81e   :  { %v3492_v50 = vpop.eup %3491 }
 0x81f   :  { %v967_v20 = vadd.f32 1.0, %v3492_v50 }
 0x821   :  { %3493 = vrcp.f32 %v967_v20 }
 0x82b   :  { %v3494_v3 = vpop.eup %3493 }
 0x82c   :  { %v970_v42 = vmul.f32 %v3494_v3, %v961_v2  ;;  %v973_v58 = vsub.f32 1.0, %v3494_v3  ;;  %v979_v12 = vmul.f32 %v3494_v3, %v4786_v5  ;;  %v4790_v5 = vld [vmem:[#allocation27_spill] sm:$0xff] }
 0x82d   :  { %v4792_v3 = vld [vmem:[#allocation31_spill] sm:$0xff] }
 0x82e   :  { %v971_v21 = vadd.f32 %v970_v42, %v890_v49  ;;  %v4791_v49 = vld [vmem:[#allocation29_spill] sm:$0xff]  ;;  %v4794_v2 = vld [vmem:[#allocation35_spill] sm:$0xff] }
 0x82f   :  { %v4793_v42 = vld [vmem:[#allocation33_spill] sm:$0xff] }
 0x830   :  { %3495 = vtanh.f32 %v971_v21  ;;  %v4788_v21 = vld [vmem:[#allocation23_spill] sm:$0xff] }
 0x83a   :  { %v3496_v6 = vpop.eup %3495 }
 0x83b   :  { %975 = vrot.lane.b32.xlu1 %v3496_v6, %s3564_s28  ;;  %v4789_v6 = vld [vmem:[#allocation25_spill] sm:$0xff] }
 0x8ad   :  { %v976_v43 = vpop.permute.xlu1 %975 }
 0x8ae   :  { %v978_v14 = vmul.f32 %v976_v43, %v973_v58 }
 0x8b0   :  { %v4322_v19 = vadd.f32 %v979_v12, %v978_v14 }
 0x8b2   :  { %4787 = vst [vmem:[#allocation17_spill] sm:$0xff] %v4322_v19  ;;  %982 = vrot.lane.b32.xlu0 %v4322_v19, %s3564_s28 }
 0x8b6   :  { %1165 = vrot.lane.b32.xlu0 %v4322_v19, %s3568_s18 }
 0x924   :  { %v4328_v20 = vpop.permute.xlu0 %982 }
 0x925   :  { %2848 = vmatmul.mubr.msk.f32.vlgmr.msra.gmra.mrb[12].mxu1 %vm38_vm0, %v4328_v20 }
 0x926   :  { %3197 = vmatpush1.bf16.msra.mxu1 %v4788_v21  ;;  %1307 = vmatprep.mubr.f32.mxu1 %v4777_v32 }
 0x927   :  { %3199 = vmatprep.subr.bf16.mxu1 %v4789_v6 }
 0x92a   :  { %3201 = vmatpush1.bf16.msra.mxu1 %v4790_v5 }
 0x92b   :  { %3203 = vmatprep.subr.bf16.mxu1 %v4791_v49 }
 0x92e   :  { %3205 = vmatpush1.bf16.msra.mxu1 %v4792_v3 }
 0x92f   :  { %3207 = vmatprep.subr.bf16.mxu1 %v4793_v42 }
 0x932   :  { %3209 = vmatpush1.bf16.msra.mxu1 %v4794_v2 }
 0x933   :  { %3210 = vmatprep.subr.bf16.mxu1 %v4776_v28 }
 0x935   :  { %2667 = vmatmul.mubr.msk.f32.vlgmr.msra.gmra.mrb[14].mxu1 %vm38_vm0, %v4250_v61  ;;  %v1129_v61 = vpop.f32.mrb[6].mxu0 }
 0x936   :  { %3212 = vmatpush3.bf16.msra.mxu1 %v4210_v51  ;;  %2877 = vmatprep.mubr.msk.f32.mxu1 %vm3567_vm2, %v4777_v32  ;;  %v2860_v4 = vpop.f32.mrb[7].mxu0 }
 0x937   :  { %3213 = vmatprep.subr.bf16.mxu1 %v4776_v28 }
 0x93a   :  { %3215 = vmatpush3.bf16.msra.mxu1 %v4216_v56 }
 0x93b   :  { %3216 = vmatprep.subr.bf16.mxu1 %v4776_v28 }
 0x93e   :  { %3218 = vmatpush3.bf16.msra.mxu1 %v4226_v34 }
 0x93f   :  { %3219 = vmatprep.subr.bf16.mxu1 %v4776_v28 }
 0x942   :  { %3221 = vmatpush3.bf16.msra.mxu1 %v4240_v55 }
 0x943   :  { %3259 = vmatprep.subr.bf16.mxu1 %v3681_v23 }
 0x9f8   :  { %v1052_v0 = vpop.f32.mrb[12].mxu1 }
 0x9f9   :  { %v1059_v22 = vrot.slane %v1052_v0, %v3858_v33  ;;  %v2849_v50 = vpop.f32.mrb[13].mxu1 }
 0x9fb   :  { %v1130_v58 = vadd.f32 %v1129_v61, %v1059_v22 }
 0x9fd   :  { %v1133_v43 = vsel %vm450_vm4, %v1130_v58, -inf }
 0x9fe   :  { %v1134_v12 = vrot.slane %v1133_v43, 4 }
 0xa00   :  { %v1135_v14 = vmax.f32 %v1133_v43, %v1134_v12 }
 0xa02   :  { %v1136_v41 = vrot.slane %v1135_v14, 2 }
 0xa04   :  { %v1137_v27 = vmax.f32 %v1135_v14, %v1136_v41 }
 0xa06   :  { %v1138_v26 = vrot.slane %v1137_v27, 1 }
 0xa08   :  { %v1139_v19 = vmax.f32 %v1137_v27, %v1138_v26  ;;  %v1309_v45 = vpop.f32.mrb[14].mxu1 }
 0xa09   :  { %v1311_v36 = vpop.f32.mrb[15].mxu1 }
 0xa0a   :  { %v1140_v39 = vsub.f32 %v1130_v58, %v1139_v19 }
 0xa0c   :  { %v1141_v37 = vmul.f32 1.442695, %v1140_v39 }
 0xa0e   :  { %3497 = vpow2.f32 %v1141_v37 }
 0xa18   :  { %v3498_v23 = vpop.eup %3497 }
 0xa19   :  { %v1143_v4 = vsel %vm450_vm4, %v3498_v23, 0.0 }
 0xa1a   :  { %v1144_v55 = vrot.slane %v1143_v4, 4 }
 0xa1c   :  { %v1145_v0 = vadd.f32 %v1144_v55, %v1143_v4  ;;  %v1166_v55 = vpop.permute.xlu0 %1165 }
 0xa1e   :  { %v1146_v50 = vrot.slane %v1145_v0, 2 }
 0xa20   :  { %v1147_v61 = vadd.f32 %v1146_v50, %v1145_v0  ;;  %v4799_v0 = vld [vmem:[#allocation11_spill] sm:$0xff]  ;;  %v4800_v50 = vld [vmem:[#allocation12_spill] sm:$0xff] }
 0xa22   :  { %v1148_v22 = vrot.slane %v1147_v61, 1 }
 0xa24   :  { %v1149_v34 = vadd.f32 %v1148_v22, %v1147_v61  ;;  %v4801_v22 = vld [vmem:[#allocation37_spill] sm:$0xff] }
 0xa26   :  { %3499 = vrcp.f32 %v1149_v34  ;;  %v4797_v34 = vld [vmem:[#allocation9_spill] sm:$0xff] }
 0xa30   :  { %v3500_v43 = vpop.eup %3499 }
 0xa31   :  { %v1151_v12 = vmul.f32 %v3500_v43, %v3498_v23  ;;  %v4795_v23 = vld [vmem:[#allocation7_spill] sm:$0xff]  ;;  %v1310_v43 = vadd.f32 %v1309_v45, %v4801_v22  ;;  %v1407_v45 = vld [vmem:[%s4652_s0 + $0x2] sm:$0x1] }
 0xa33   :  { %1154 = vperm.xlu1 %3473, %v1151_v12  }
 0xab2   :  { %v1155_v41 = vpop.permute.xlu1 %1154 }
 0xab3   :  { %v1157_v26 = vmul.f32 %v1155_v41, %v4297_v48  ;;  %v4798_v48 = vld [vmem:[#allocation10_spill] sm:$0xff] }
 0xab5   :  { %v1158_v27 = vsel %vm376_vm3, %v1157_v26, 0.0 }
 0xab6   :  { %v1159_v39 = vrot.slane %v1158_v27, 4 }
 0xab8   :  { %v1160_v37 = vadd.f32 %v1159_v39, %v1158_v27 }
 0xaba   :  { %v1161_v19 = vrot.slane %v1160_v37, 2 }
 0xabc   :  { %v1162_v58 = vadd.f32 %v1161_v19, %v1160_v37  ;;  %v1312_v19 = vadd.f32 %v1311_v36, %v4194_v18 }
 0xabe   :  { %v1163_v14 = vrot.slane %v1162_v58, 1 }
 0xac0   :  { %v1164_v56 = vadd.f32 %v1163_v14, %v1162_v58 }
 0xac2   :  { %v1168_v4 = vsel %vm376_vm3, %v1164_v56, %v1166_v55  ;;  %v4796_v56 = vld [vmem:[#allocation8_spill] sm:$0xff] }
 0xac3   :  { %2666 = vmatmul.mubr.msk.f32.vlgmr.msra.gmra.mrb[8].mxu0 %vm40_vm1, %v1168_v4 }
 0xac4   :  { %3225 = vmatpush1.bf16.msra.mxu0 %v3633_v7 }
 0xac5   :  { %3227 = vmatprep.subr.bf16.mxu0 %v3645_v11 }
 0xac8   :  { %3229 = vmatpush1.bf16.msra.mxu0 %v3658_v15 }
 0xac9   :  { %3231 = vmatprep.subr.bf16.mxu0 %v3661_v16 }
 0xacc   :  { %3233 = vmatpush1.bf16.msra.mxu0 %v3687_v25 }
 0xacd   :  { %3235 = vmatprep.subr.bf16.mxu0 %v3699_v29 }
 0xad0   :  { %3237 = vmatpush1.bf16.msra.mxu0 %v3731_v40 }
 0xad1   :  { %3239 = vmatprep.subr.bf16.mxu0 %v3744_v44 }
 0xad4   :  { %3241 = vmatpush1.bf16.msra.mxu0 %v3770_v53 }
 0xad5   :  { %3243 = vmatprep.subr.bf16.mxu0 %v3782_v57 }
 0xad8   :  { %3245 = vmatpush1.bf16.msra.mxu0 %v3800_v63 }
 0xad9   :  { %3247 = vmatprep.subr.bf16.mxu0 %v4795_v23 }
 0xadc   :  { %3249 = vmatpush1.bf16.msra.mxu0 %v4796_v56 }
 0xadd   :  { %3251 = vmatprep.subr.bf16.mxu0 %v4797_v34 }
 0xae0   :  { %3253 = vmatpush1.bf16.msra.mxu0 %v4798_v48 }
 0xae1   :  { %3255 = vmatprep.subr.bf16.mxu0 %v4799_v0 }
 0xae4   :  { %3257 = vmatpush1.bf16.msra.mxu0 %v4800_v50 }
 0xae5   :  { %3286 = vmatprep.subr.bf16.mxu0 %v4776_v28 }
 0xb96   :  { %v1238_v61 = vpop.f32.mrb[8].mxu0 }
 0xb97   :  { %v1239_v12 = vadd.f32 %v1238_v61, %v4189_v59  ;;  %v1240_v41 = vpop.f32.mrb[9].mxu0 }
 0xb98   :  { %v1241_v14 = vadd.f32 %v1240_v41, %v4197_v10 }
 0xb99   :  { %v1314_v26 = vadd.f32 %v1310_v43, %v1239_v12 }
 0xb9b   :  { %v2668_v27 = vmul.f32 -1.442695, %v1314_v26 }
 0xb9d   :  { %3501 = vpow2.f32 %v2668_v27 }
 0xba7   :  { %v3502_v39 = vpop.eup %3501 }
 0xba8   :  { %v1318_v37 = vadd.f32 1.0, %v3502_v39 }
 0xbaa   :  { %3503 = vrcp.f32 %v1318_v37 }
 0xbb4   :  { %v3504_v58 = vpop.eup %3503 }
 0xbb5   :  { %v1321_v55 = vmul.f32 %v3504_v58, %v1312_v19  ;;  %v1324_v61 = vsub.f32 1.0, %v3504_v58  ;;  %v1330_v12 = vmul.f32 %v3504_v58, %v4246_v9 }
 0xbb7   :  { %v1322_v4 = vadd.f32 %v1321_v55, %v1241_v14  ;;  %v1413_v55 = vrot.slane %v1407_v45, %v3858_v33 }
 0xbb9   :  { %3505 = vtanh.f32 %v1322_v4  ;;  %v2670_v4 = vld [vmem:[%s4653_s1 + $0x10] sm:$0xff] }
 0xbc3   :  { %v3506_v50 = vpop.eup %3505 }
 0xbc4   :  { %1326 = vrot.lane.b32.xlu1 %v3506_v50, %s3564_s28 }
 0xbc8   :  { %1417 = vrot.lane.b32.xlu1 %v1407_v45, %s3564_s28  ;;  %v4803_v45 = vld [vmem:[#allocation39_spill] sm:$0xff] }
 0xc36   :  { %v1327_v43 = vpop.permute.xlu1 %1326 }
 0xc37   :  { %v1329_v36 = vmul.f32 %v1327_v43, %v1324_v61  ;;  %v4430_v61 = vadd.f32 %v2670_v4, %v1413_v55  ;;  %v4802_v43 = vld [vmem:[#allocation21_spill] sm:$0xff] }
 0xc39   :  { %v4388_v26 = vadd.f32 %v1330_v12, %v1329_v36  ;;  %v4804_v12 = vld [vmem:[#allocation40_spill] sm:$0xff]  ;;  %v4805_v36 = vld [vmem:[#allocation41_spill] sm:$0xff] }
 0xc3a   :  { %v1418_v37 = vpop.permute.xlu1 %1417 }
 0xc3b   :  { %1333 = vrot.lane.b32.xlu0 %v4388_v26, %s3564_s28 }
 0xcad   :  { %v1334_v41 = vpop.permute.xlu0 %1333 }
 0xcae   :  { %2878 = vmatmul.mubr.msk.f32.vlgmr.msra.gmra.mrb[16].mxu1 %vm38_vm0, %v1334_v41  ;;  %v1424_v19 = vsel %vm38_vm0, %v1334_v41, %v1418_v37 }
 0xcaf   :  { %3261 = vmatpush1.bf16.msra.mxu1 %v3705_v31  ;;  %1563 = vmatprep.mubr.f32.mxu1 %v4777_v32 }
 0xcb0   :  { %3263 = vmatprep.subr.bf16.mxu1 %v3716_v35 }
 0xcb3   :  { %3265 = vmatpush1.bf16.msra.mxu1 %v3725_v38 }
 0xcb4   :  { %3267 = vmatprep.subr.bf16.mxu1 %v3749_v46 }
 0xcb7   :  { %3269 = vmatpush1.bf16.msra.mxu1 %v3767_v52 }
 0xcb8   :  { %3271 = vmatprep.subr.bf16.mxu1 %v3773_v54 }
 0xcbb   :  { %3273 = vmatpush1.bf16.msra.mxu1 %v3797_v62 }
 0xcbc   :  { %3274 = vmatprep.subr.bf16.mxu1 %v4776_v28 }
 0xcbe   :  { %2672 = vmatmul.mubr.msk.f32.vlgmr.msra.gmra.mrb[18].mxu1 %vm38_vm0, %v4328_v20 }
 0xcbf   :  { %3276 = vmatpush3.bf16.msra.mxu1 %v3894_v13  ;;  %2896 = vmatprep.mubr.msk.f32.mxu1 %vm3567_vm2, %v4777_v32 }
 0xcc0   :  { %3277 = vmatprep.subr.bf16.mxu1 %v4776_v28 }
 0xcc3   :  { %3279 = vmatpush3.bf16.msra.mxu1 %v3902_v17 }
 0xcc4   :  { %3280 = vmatprep.subr.bf16.mxu1 %v4776_v28 }
 0xcc7   :  { %3282 = vmatpush3.bf16.msra.mxu1 %v3912_v24 }
 0xcc8   :  { %3283 = vmatprep.subr.bf16.mxu1 %v4776_v28 }
 0xccb   :  { %3285 = vmatpush3.bf16.msra.mxu1 %v3923_v30 }
 0xccc   :  { %3293 = vmatprep.subr.bf16.mxu1 %v3978_v8 }
 0xd81   :  { %v1403_v9 = vpop.f32.mrb[16].mxu1 }
 0xd82   :  { %v4415_v20 = vadd.f32 %v1403_v9, %v4278_v1  ;;  %v2879_v50 = vpop.f32.mrb[17].mxu1  ;;  %v4806_v9 = vld [vmem:[#allocation6_spill] sm:$0xff] }
 0xd83   :  { %v4807_v50 = vld [vmem:[#allocation13_spill] sm:$0xff] }
 0xd84   :  { %1421 = vrot.lane.b32.xlu0 %v4415_v20, %s3568_s18 }
 0xd91   :  { %v1565_v27 = vpop.f32.mrb[18].mxu1 }
 0xd92   :  { %v1567_v39 = vpop.f32.mrb[19].mxu1  ;;  %v1566_v37 = vadd.f32 %v1565_v27, %v4807_v50 }
 0xdf6   :  { %v1422_v58 = vpop.permute.xlu0 %1421 }
 0xdf7   :  { %v1425_v14 = vsel %vm40_vm1, %v1424_v19, %v1422_v58  ;;  %2671 = vmatprep.mubr.msk.f32.mxu0 %vm90_vm5, %v1422_v58  ;;  %v4808_v19 = vld [vmem:[#allocation14_spill] sm:$0xff] }
 0xdf8   :  { %1493 = vmatmul.mubr.f32.vlgmr.msra.gmra.mrb[10].mxu0 %v1425_v14 }
 0xdf9   :  { %3288 = vmatpush3.bf16.msra.mxu0 %v3940_v47  ;;  %2907 = vmatprep.mubr.msk.f32.mxu0 %vm3567_vm2, %v4777_v32 }
 0xdfa   :  { %3289 = vmatprep.subr.bf16.mxu0 %v4776_v28 }
 0xdfd   :  { %3291 = vmatpush3.bf16.msra.mxu0 %v3958_v60 }
 0xdfe   :  { %3317 = vmatprep.subr.bf16.mxu0 %v4802_v43 }
 0xe00   :  { %2908 = vmatmul.mubr.msk.f32.vlgmr.msra.gmra.mrb[12].mxu0 %vm376_vm3, %v4430_v61 }
 0xe01   :  { %3319 = vmatpush1.bf16.msra.mxu0 %v4788_v21  ;;  %1914 = vmatprep.mubr.f32.mxu0 %v4777_v32 }
 0xe02   :  { %3321 = vmatprep.subr.bf16.mxu0 %v4789_v6 }
 0xe05   :  { %3323 = vmatpush1.bf16.msra.mxu0 %v4790_v5  ;;  %v4810_v5 = vld [vmem:[#allocation16_spill] sm:$0xff] }
 0xe06   :  { %3325 = vmatprep.subr.bf16.mxu0 %v4791_v49 }
 0xe09   :  { %3327 = vmatpush1.bf16.msra.mxu0 %v4792_v3 }
 0xe0a   :  { %3329 = vmatprep.subr.bf16.mxu0 %v4793_v42 }
 0xe0d   :  { %3331 = vmatpush1.bf16.msra.mxu0 %v4794_v2 }
 0xe0e   :  { %3332 = vmatprep.subr.bf16.mxu0 %v4776_v28 }
 0xe10   :  { %2677 = vmatmul.mubr.msk.f32.vlgmr.msra.gmra.mrb[14].mxu0 %vm38_vm0, %v1334_v41 }
 0xe11   :  { %3334 = vmatpush3.bf16.msra.mxu0 %v4210_v51  ;;  %2926 = vmatprep.mubr.msk.f32.mxu0 %vm3567_vm2, %v4777_v32 }
 0xe12   :  { %3335 = vmatprep.subr.bf16.mxu0 %v4776_v28 }
 0xe15   :  { %3337 = vmatpush3.bf16.msra.mxu0 %v4803_v45 }
 0xe16   :  { %3338 = vmatprep.subr.bf16.mxu0 %v4776_v28 }
 0xe19   :  { %3340 = vmatpush3.bf16.msra.mxu0 %v4804_v12 }
 0xe1a   :  { %3341 = vmatprep.subr.bf16.mxu0 %v4776_v28 }
 0xe1d   :  { %3343 = vmatpush3.bf16.msra.mxu0 %v4805_v36  ;;  %v4809_v36 = vld [vmem:[#allocation15_spill] sm:$0xff] }
 0xe1e   :  { %3381 = vmatprep.subr.bf16.mxu0 %v4806_v9  ;;  %v1568_v9 = vadd.f32 %v1567_v39, %v4809_v36 }
 0xecb   :  { %v1494_v41 = vpop.f32.mrb[10].mxu0 }
 0xecc   :  { %v1495_v58 = vadd.f32 %v1494_v41, %v4808_v19  ;;  %v1496_v14 = vpop.f32.mrb[11].mxu0 }
 0xecd   :  { %v1497_v27 = vadd.f32 %v1496_v14, %v4810_v5  ;;  %v4814_v14 = vld [vmem:[#allocation19_spill] sm:$0xff] }
 0xece   :  { %v1570_v55 = vadd.f32 %v1566_v37, %v1495_v58 }
 0xed0   :  { %v2673_v4 = vmul.f32 -1.442695, %v1570_v55  ;;  %v4811_v55 = vld [vmem:[#allocation17_spill] sm:$0xff] }
 0xed2   :  { %3507 = vpow2.f32 %v2673_v4 }
 0xed3   :  { %v1736_v45 = vpop.f32.mrb[12].mxu0 }
 0xed4   :  { %v2909_v51 = vpop.f32.mrb[13].mxu0 }
 0xedc   :  { %v3508_v2 = vpop.eup %3507 }
 0xedd   :  { %v1574_v42 = vadd.f32 1.0, %v3508_v2 }
 0xedf   :  { %3509 = vrcp.f32 %v1574_v42 }
 0xee3   :  { %v4458_v12 = vpop.f32.mrb[14].mxu0 }
 0xee4   :  { %v4460_v3 = vpop.f32.mrb[15].mxu0 }
 0xee9   :  { %v3510_v49 = vpop.eup %3509 }
 0xeea   :  { %v1577_v50 = vmul.f32 %v3510_v49, %v1568_v9  ;;  %v1580_v58 = vsub.f32 1.0, %v3510_v49  ;;  %v1586_v2 = vmul.f32 %v3510_v49, %v4811_v55  ;;  %v4815_v49 = vld [vmem:[#allocation20_spill] sm:$0xff]  ;;  %v4816_v9 = vld [vmem:[#allocation22_spill] sm:$0xff] }
 0xeeb   :  { %v4822_v55 = vld [vmem:[#allocation34_spill] sm:$0xff] }
 0xeec   :  { %v1578_v41 = vadd.f32 %v1577_v50, %v1497_v27  ;;  %v4813_v50 = vld [vmem:[#allocation18_spill] sm:$0xff]  ;;  %v4817_v27 = vld [vmem:[#allocation24_spill] sm:$0xff] }
 0xeee   :  { %3511 = vtanh.f32 %v1578_v41  ;;  %v4818_v41 = vld [vmem:[#allocation26_spill] sm:$0xff] }
 0xef8   :  { %v3512_v37 = vpop.eup %3511 }
 0xef9   :  { %1582 = vrot.lane.b32.xlu1 %v3512_v37, %s3564_s28  ;;  %v4819_v37 = vld [vmem:[#allocation28_spill] sm:$0xff] }
 0xf6b   :  { %v1583_v51 = vpop.permute.xlu1 %1582 }
 0xf6c   :  { %v1585_v42 = vmul.f32 %v1583_v51, %v1580_v58  ;;  %v4820_v58 = vld [vmem:[#allocation30_spill] sm:$0xff]  ;;  %v4821_v51 = vld [vmem:[#allocation32_spill] sm:$0xff] }
 0xf6e   :  { %v4466_v4 = vadd.f32 %v1586_v2, %v1585_v42  ;;  %v4823_v2 = vld [vmem:[#allocation36_spill] sm:$0xff]  ;;  %v4824_v42 = vld [vmem:[#allocation5_spill] sm:$0xff] }
 0xf70   :  { %4812 = vst [vmem:[#allocation7_spill] sm:$0xff] %v4466_v4  ;;  %1589 = vrot.lane.b32.xlu0 %v4466_v4, %s3564_s28 }
 0xf74   :  { %1772 = vrot.lane.b32.xlu0 %v4466_v4, %s3568_s18 }
 0xfe2   :  { %v4472_v39 = vpop.permute.xlu0 %1589 }
 0xfe3   :  { %2897 = vmatmul.mubr.msk.f32.vlgmr.msra.gmra.mrb[20].mxu1 %vm38_vm0, %v4472_v39 }
 0xfe4   :  { %3295 = vmatpush1.bf16.msra.mxu1 %v4813_v50  ;;  %1843 = vmatprep.mubr.f32.mxu1 %v4777_v32 }
 0xfe5   :  { %3297 = vmatprep.subr.bf16.mxu1 %v4814_v14 }
 0xfe8   :  { %3299 = vmatpush1.bf16.msra.mxu1 %v4815_v49 }
 0xfe9   :  { %3301 = vmatprep.subr.bf16.mxu1 %v4816_v9 }
 0xfec   :  { %3303 = vmatpush1.bf16.msra.mxu1 %v4817_v27 }
 0xfed   :  { %3305 = vmatprep.subr.bf16.mxu1 %v4818_v41 }
 0xff0   :  { %3307 = vmatpush1.bf16.msra.mxu1 %v4819_v37 }
 0xff1   :  { %3309 = vmatprep.subr.bf16.mxu1 %v4820_v58 }
 0xff4   :  { %3311 = vmatpush1.bf16.msra.mxu1 %v4821_v51 }
 0xff5   :  { %3313 = vmatprep.subr.bf16.mxu1 %v4822_v55 }
 0xff8   :  { %3315 = vmatpush1.bf16.msra.mxu1 %v4823_v2 }
 0xff9   :  { %3345 = vmatprep.subr.bf16.mxu1 %v4824_v42 }
0x10b6   :  { %v1659_v14 = vpop.f32.mrb[20].mxu1 }
0x10b7   :  { %v1666_v49 = vrot.slane %v1659_v14, %v3858_v33  ;;  %v2898_v9 = vpop.f32.mrb[21].mxu1 }
0x10b9   :  { %v1737_v50 = vadd.f32 %v1736_v45, %v1666_v49 }
0x10bb   :  { %v1740_v27 = vsel %vm450_vm4, %v1737_v50, -inf }
0x10bc   :  { %v1741_v41 = vrot.slane %v1740_v27, 4 }
0x10be   :  { %v1742_v4 = vmax.f32 %v1740_v27, %v1741_v41 }
0x10c0   :  { %v1743_v37 = vrot.slane %v1742_v4, 2 }
0x10c2   :  { %v1744_v5 = vmax.f32 %v1742_v4, %v1743_v37 }
0x10c4   :  { %v1745_v58 = vrot.slane %v1744_v5, 1 }
0x10c6   :  { %v1746_v36 = vmax.f32 %v1744_v5, %v1745_v58 }
0x10c8   :  { %v1747_v51 = vsub.f32 %v1737_v50, %v1746_v36 }
0x10ca   :  { %v1748_v19 = vmul.f32 1.442695, %v1747_v51  ;;  %v1773_v51 = vpop.permute.xlu0 %1772 }
0x10cc   :  { %3513 = vpow2.f32 %v1748_v19 }
0x10d6   :  { %v3514_v55 = vpop.eup %3513 }
0x10d7   :  { %v1750_v2 = vsel %vm450_vm4, %v3514_v55, 0.0 }
0x10d8   :  { %v1751_v42 = vrot.slane %v1750_v2, 4 }
0x10da   :  { %v1752_v6 = vadd.f32 %v1751_v42, %v1750_v2  ;;  %v4827_v42 = vld [vmem:[#allocation21_spill] sm:$0xff] }
0x10dc   :  { %v1753_v21 = vrot.slane %v1752_v6, 2 }
0x10de   :  { %v1754_v14 = vadd.f32 %v1753_v21, %v1752_v6 }
0x10e0   :  { %v1755_v9 = vrot.slane %v1754_v14, 1 }
0x10e2   :  { %v1756_v45 = vadd.f32 %v1755_v9, %v1754_v14  ;;  %v4828_v14 = vld [vmem:[#allocation23_spill] sm:$0xff]  ;;  %v4829_v9 = vld [vmem:[#allocation25_spill] sm:$0xff] }
0x10e4   :  { %3515 = vrcp.f32 %v1756_v45  ;;  %v4831_v45 = vld [vmem:[#allocation29_spill] sm:$0xff] }
0x10ee   :  { %v3516_v49 = vpop.eup %3515 }
0x10ef   :  { %v1758_v43 = vmul.f32 %v3516_v49, %v3514_v55  ;;  %v4832_v49 = vld [vmem:[#allocation31_spill] sm:$0xff] }
0x10f1   :  { %1761 = vperm.xlu1 %3473, %v1758_v43  }
0x1170   :  { %v1762_v27 = vpop.permute.xlu1 %1761 }
0x1171   :  { %v1764_v4 = vmul.f32 %v1762_v27, %v4430_v61  ;;  %v4833_v27 = vld [vmem:[#allocation33_spill] sm:$0xff] }
0x1173   :  { %v1765_v5 = vsel %vm376_vm3, %v1764_v4, 0.0  ;;  %v4835_v4 = vld [vmem:[#allocation38_spill] sm:$0xff] }
0x1174   :  { %v1766_v36 = vrot.slane %v1765_v5, 4 }
0x1176   :  { %v1767_v19 = vadd.f32 %v1766_v36, %v1765_v5  ;;  %v4836_v5 = vld [vmem:[#allocation39_spill] sm:$0xff]  ;;  %v4837_v36 = vld [vmem:[#allocation40_spill] sm:$0xff] }
0x1178   :  { %v1768_v50 = vrot.slane %v1767_v19, 2 }
0x117a   :  { %v1769_v41 = vadd.f32 %v1768_v50, %v1767_v19  ;;  %v4838_v19 = vld [vmem:[#allocation41_spill] sm:$0xff] }
0x117c   :  { %v1770_v37 = vrot.slane %v1769_v41, 1 }
0x117e   :  { %v1771_v58 = vadd.f32 %v1770_v37, %v1769_v41  ;;  %v4839_v41 = vld [vmem:[#allocation13_spill] sm:$0xff] }
0x1180   :  { %v1775_v21 = vsel %vm376_vm3, %v1771_v58, %v1773_v51  ;;  %v4840_v58 = vld [vmem:[#allocation14_spill] sm:$0xff] }
0x1181   :  { %2676 = vmatmul.mubr.msk.f32.vlgmr.msra.gmra.mrb[22].mxu1 %vm40_vm1, %v1775_v21 }
0x1182   :  { %3347 = vmatpush1.bf16.msra.mxu1 %v3633_v7  ;;  %v4825_v7 = vld [vmem:[#allocation12_spill] sm:$0xff] }
0x1183   :  { %3349 = vmatprep.subr.bf16.mxu1 %v3645_v11 }
0x1186   :  { %3351 = vmatpush1.bf16.msra.mxu1 %v3658_v15  ;;  %v1917_v15 = vadd.f32 %v4458_v12, %v4801_v22 }
0x1187   :  { %3353 = vmatprep.subr.bf16.mxu1 %v3661_v16 }
0x118a   :  { %3355 = vmatpush1.bf16.msra.mxu1 %v3687_v25 }
0x118b   :  { %3357 = vmatprep.subr.bf16.mxu1 %v3699_v29 }
0x118e   :  { %3359 = vmatpush1.bf16.msra.mxu1 %v3731_v40 }
0x118f   :  { %3361 = vmatprep.subr.bf16.mxu1 %v3744_v44 }
0x1192   :  { %3363 = vmatpush1.bf16.msra.mxu1 %v3770_v53 }
0x1193   :  { %3365 = vmatprep.subr.bf16.mxu1 %v3782_v57  ;;  %v1919_v57 = vadd.f32 %v4460_v3, %v4194_v18 }
0x1196   :  { %3367 = vmatpush1.bf16.msra.mxu1 %v3800_v63 }
0x1197   :  { %3369 = vmatprep.subr.bf16.mxu1 %v4795_v23 }
0x119a   :  { %3371 = vmatpush1.bf16.msra.mxu1 %v4796_v56 }
0x119b   :  { %3373 = vmatprep.subr.bf16.mxu1 %v4797_v34 }
0x119e   :  { %3375 = vmatpush1.bf16.msra.mxu1 %v4798_v48  ;;  %v2014_v48 = vld [vmem:[%s4652_s0 + $0x3] sm:$0x1] }
0x119f   :  { %3377 = vmatprep.subr.bf16.mxu1 %v4799_v0 }
0x11a2   :  { %3379 = vmatpush1.bf16.msra.mxu1 %v4825_v7 }
0x11a3   :  { %3408 = vmatprep.subr.bf16.mxu1 %v4776_v28 }
0x1254   :  { %v1845_v11 = vpop.f32.mrb[22].mxu1 }
0x1255   :  { %v1846_v16 = vadd.f32 %v1845_v11, %v4189_v59  ;;  %v1847_v25 = vpop.f32.mrb[23].mxu1 }
0x1256   :  { %v1848_v6 = vadd.f32 %v1847_v25, %v4197_v10 }
0x1257   :  { %v1921_v29 = vadd.f32 %v1917_v15, %v1846_v16 }
0x1259   :  { %v2678_v40 = vmul.f32 -1.442695, %v1921_v29 }
0x125b   :  { %3517 = vpow2.f32 %v2678_v40 }
0x1265   :  { %v3518_v44 = vpop.eup %3517 }
0x1266   :  { %v1925_v53 = vadd.f32 1.0, %v3518_v44 }
0x1268   :  { %3519 = vrcp.f32 %v1925_v53 }
0x1272   :  { %v3520_v63 = vpop.eup %3519 }
0x1273   :  { %v1928_v23 = vmul.f32 %v3520_v63, %v1919_v57  ;;  %v1931_v0 = vsub.f32 1.0, %v3520_v63  ;;  %v1937_v43 = vmul.f32 %v3520_v63, %v4388_v26  ;;  %v4842_v63 = vld [vmem:[#allocation16_spill] sm:$0xff] }
0x1275   :  { %v1929_v56 = vadd.f32 %v1928_v23, %v1848_v6 }
0x1277   :  { %3521 = vtanh.f32 %v1929_v56 }
0x1281   :  { %v3522_v34 = vpop.eup %3521 }
0x1282   :  { %1933 = vrot.lane.b32.xlu1 %v3522_v34, %s3564_s28 }
0x1286   :  { %2024 = vrot.lane.b32.xlu1 %v2014_v48, %s3564_s28 }
0x12f4   :  { %v1934_v61 = vpop.permute.xlu1 %1933 }
0x12f5   :  { %v1936_v3 = vmul.f32 %v1934_v61, %v1931_v0  ;;  %v4843_v61 = vld [vmem:[#allocation7_spill] sm:$0xff] }
0x12f7   :  { %v4526_v12 = vadd.f32 %v1937_v43, %v1936_v3 }
0x12f9   :  { %1940 = vrot.lane.b32.xlu0 %v4526_v12, %s3564_s28 }
0x136b   :  { %v1941_v55 = vpop.permute.xlu0 %1940 }
0x136c   :  { %2927 = vmatmul.mubr.msk.f32.vlgmr.msra.gmra.mrb[16].mxu0 %vm38_vm0, %v1941_v55 }
0x136d   :  { %3383 = vmatpush1.bf16.msra.mxu0 %v3705_v31  ;;  %2170 = vmatprep.mubr.f32.mxu0 %v4777_v32  ;;  %v2621_v31 = vrot.slane %v4415_v20, 7 }
0x136e   :  { %3385 = vmatprep.subr.bf16.mxu0 %v3716_v35 }
0x1371   :  { %3387 = vmatpush1.bf16.msra.mxu0 %v3725_v38 }
0x1372   :  { %3389 = vmatprep.subr.bf16.mxu0 %v3749_v46 }
0x1375   :  { %3391 = vmatpush1.bf16.msra.mxu0 %v3767_v52 }
0x1376   :  { %3393 = vmatprep.subr.bf16.mxu0 %v3773_v54  ;;  %v4826_v54 = vld [vmem:[#allocation42_spill] sm:$0xff] }
0x1379   :  { %3395 = vmatpush1.bf16.msra.mxu0 %v3797_v62  ;;  %v2629_v62 = vsel %vm2628_vm6, %v4826_v54, %v2621_v31  ;;  %v4848_v54 = vld [vmem:[#allocation24_spill] sm:$0xff] }
0x137a   :  { %3396 = vmatprep.subr.bf16.mxu0 %v4776_v28 }
0x137c   :  { %2682 = vmatmul.mubr.msk.f32.vlgmr.msra.gmra.mrb[18].mxu0 %vm38_vm0, %v4472_v39  ;;  %v2680_v39 = vld [vmem:[%s4653_s1 + $0x18] sm:$0xff] }
0x137d   :  { %3398 = vmatpush3.bf16.msra.mxu0 %v3894_v13  ;;  %2945 = vmatprep.mubr.msk.f32.mxu0 %vm3567_vm2, %v4777_v32 }
0x137e   :  { %3399 = vmatprep.subr.bf16.mxu0 %v4776_v28 }
0x1381   :  { %3401 = vmatpush3.bf16.msra.mxu0 %v3902_v17 }
0x1382   :  { %3402 = vmatprep.subr.bf16.mxu0 %v4776_v28 }
0x1385   :  { %3404 = vmatpush3.bf16.msra.mxu0 %v3912_v24 }
0x1386   :  { %3405 = vmatprep.subr.bf16.mxu0 %v4776_v28 }
0x1389   :  { %3407 = vmatpush3.bf16.msra.mxu0 %v3923_v30  ;;  %v2025_v30 = vpop.permute.xlu1 %2024 }
0x138a   :  { %3415 = vmatprep.subr.bf16.mxu0 %v3978_v8  ;;  %v2031_v8 = vsel %vm38_vm0, %v1941_v55, %v2025_v30  ;;  %v4852_v30 = vld [vmem:[#allocation32_spill] sm:$0xff] }
0x143f   :  { %v2010_v35 = vpop.f32.mrb[16].mxu0 }
0x1440   :  { %v2011_v38 = vadd.f32 %v2010_v35, %v4278_v1  ;;  %v2928_v46 = vpop.f32.mrb[17].mxu0  ;;  %v2020_v1 = vrot.slane %v2014_v48, %v3858_v33  ;;  %v4844_v35 = vld [vmem:[#allocation18_spill] sm:$0xff] }
0x1441   :  { %v4846_v46 = vld [vmem:[#allocation20_spill] sm:$0xff] }
0x1442   :  { %v2623_v52 = vrot.slane %v2011_v38, 6  ;;  %2028 = vrot.lane.b32.xlu0 %v2011_v38, %s3568_s18  ;;  %v4569_v2 = vadd.f32 %v2680_v39, %v2020_v1  ;;  %v4845_v38 = vld [vmem:[#allocation19_spill] sm:$0xff] }
0x1444   :  { %v4556_v13 = vsel %vm2630_vm7, %v2629_v62, %v2623_v52  ;;  %v4847_v52 = vld [vmem:[#allocation22_spill] sm:$0xff] }
0x1445   :  { %v4849_v62 = vld [vmem:[#allocation26_spill] sm:$0xff] }
0x144f   :  { %v2172_v17 = vpop.f32.mrb[18].mxu0 }
0x1450   :  { %v2174_v24 = vpop.f32.mrb[19].mxu0  ;;  %v2173_v37 = vadd.f32 %v2172_v17, %v4839_v41  ;;  %v4850_v17 = vld [vmem:[#allocation28_spill] sm:$0xff] }
0x14b4   :  { %v2029_v26 = vpop.permute.xlu0 %2028 }
0x14b5   :  { %v2032_v20 = vsel %vm40_vm1, %v2031_v8, %v2029_v26  ;;  %2681 = vmatprep.mubr.msk.f32.mxu1 %vm90_vm5, %v2029_v26  ;;  %v4853_v8 = vld [vmem:[#allocation34_spill] sm:$0xff]  ;;  %v4854_v26 = vld [vmem:[#allocation36_spill] sm:$0xff] }
0x14b6   :  { %2100 = vmatmul.mubr.f32.vlgmr.msra.gmra.mrb[24].mxu1 %v2032_v20 }
0x14b7   :  { %3410 = vmatpush3.bf16.msra.mxu1 %v3940_v47  ;;  %2956 = vmatprep.mubr.msk.f32.mxu1 %vm3567_vm2, %v4777_v32  ;;  %v4830_v47 = vld [vmem:[#allocation27_spill] sm:$0xff] }
0x14b8   :  { %3411 = vmatprep.subr.bf16.mxu1 %v4776_v28 }
0x14bb   :  { %3413 = vmatpush3.bf16.msra.mxu1 %v3958_v60  ;;  %v4834_v60 = vld [vmem:[#allocation35_spill] sm:$0xff] }
0x14bc   :  { %3439 = vmatprep.subr.bf16.mxu1 %v4827_v42 }
0x14be   :  { %2957 = vmatmul.mubr.msk.f32.vlgmr.msra.gmra.mrb[26].mxu1 %vm376_vm3, %v4569_v2 }
0x14bf   :  { %3441 = vmatpush1.bf16.msra.mxu1 %v4828_v14  ;;  %2521 = vmatprep.mubr.f32.mxu1 %v4777_v32 }
0x14c0   :  { %3443 = vmatprep.subr.bf16.mxu1 %v4829_v9 }
0x14c3   :  { %3445 = vmatpush1.bf16.msra.mxu1 %v4830_v47 }
0x14c4   :  { %3447 = vmatprep.subr.bf16.mxu1 %v4831_v45 }
0x14c7   :  { %3449 = vmatpush1.bf16.msra.mxu1 %v4832_v49 }
0x14c8   :  { %3451 = vmatprep.subr.bf16.mxu1 %v4833_v27 }
0x14cb   :  { %3453 = vmatpush1.bf16.msra.mxu1 %v4834_v60 }
0x14cc   :  { %3454 = vmatprep.subr.bf16.mxu1 %v4776_v28 }
0x14ce   :  { %2687 = vmatmul.mubr.msk.f32.vlgmr.msra.gmra.mrb[28].mxu1 %vm38_vm0, %v1941_v55 }
0x14cf   :  { %3456 = vmatpush3.bf16.msra.mxu1 %v4835_v4  ;;  %2975 = vmatprep.mubr.msk.f32.mxu1 %vm3567_vm2, %v4777_v32 }
0x14d0   :  { %3457 = vmatprep.subr.bf16.mxu1 %v4776_v28 }
0x14d3   :  { %3459 = vmatpush3.bf16.msra.mxu1 %v4836_v5 }
0x14d4   :  { %3460 = vmatprep.subr.bf16.mxu1 %v4776_v28 }
0x14d7   :  { %3462 = vmatpush3.bf16.msra.mxu1 %v4837_v36 }
0x14d8   :  { %3463 = vmatprep.subr.bf16.mxu1 %v4776_v28  ;;  %v4841_v28 = vld [vmem:[#allocation15_spill] sm:$0xff] }
0x14d9   :  { %v2175_v53 = vadd.f32 %v2174_v24, %v4841_v28  ;;  %v4851_v24 = vld [vmem:[#allocation30_spill] sm:$0xff] }
0x14db   :  { %3465 = vmatpush3.bf16.msra.mxu1 %v4838_v19 }
0x1589   :  { %v2101_v50 = vpop.f32.mrb[24].mxu1 }
0x158a   :  { %v2102_v51 = vadd.f32 %v2101_v50, %v4840_v58  ;;  %v2103_v21 = vpop.f32.mrb[25].mxu1 }
0x158b   :  { %v2104_v6 = vadd.f32 %v2103_v21, %v4842_v63 }
0x158c   :  { %v2177_v7 = vadd.f32 %v2173_v37, %v2102_v51 }
0x158e   :  { %v2683_v11 = vmul.f32 -1.442695, %v2177_v7 }
0x1590   :  { %3523 = vpow2.f32 %v2683_v11 }
0x1591   :  { %v2343_v15 = vpop.f32.mrb[26].mxu1 }
0x1592   :  { %v2958_v16 = vpop.f32.mrb[27].mxu1 }
0x159a   :  { %v3524_v25 = vpop.eup %3523 }
0x159b   :  { %v2181_v29 = vadd.f32 1.0, %v3524_v25 }
0x159d   :  { %3525 = vrcp.f32 %v2181_v29 }
0x15a1   :  { %v4596_v40 = vpop.f32.mrb[28].mxu1 }
0x15a2   :  { %v4598_v44 = vpop.f32.mrb[29].mxu1 }
0x15a7   :  { %v3526_v57 = vpop.eup %3525 }
0x15a8   :  { %v2184_v23 = vmul.f32 %v3526_v57, %v2175_v53  ;;  %v2187_v48 = vsub.f32 1.0, %v3526_v57  ;;  %v2193_v43 = vmul.f32 %v3526_v57, %v4843_v61 }
0x15aa   :  { %v2185_v56 = vadd.f32 %v2184_v23, %v2104_v6 }
0x15ac   :  { %3527 = vtanh.f32 %v2185_v56  ;;  %v2524_v56 = vadd.f32 %v4596_v40, %v4801_v22 }
0x15b6   :  { %v3528_v34 = vpop.eup %3527 }
0x15b7   :  { %2189 = vrot.lane.b32.xlu1 %v3528_v34, %s3564_s28 }
0x1629   :  { %v2190_v0 = vpop.permute.xlu1 %2189 }
0x162a   :  { %v2192_v3 = vmul.f32 %v2190_v0, %v2187_v48 }
0x162c   :  { %v2194_v55 = vadd.f32 %v2193_v43, %v2192_v3  ;;  %v2526_v3 = vadd.f32 %v4598_v44, %v4194_v18 }
0x162e   :  { %2196 = vrot.lane.b32.xlu0 %v2194_v55, %s3564_s28 }
0x1632   :  { %2379 = vrot.lane.b32.xlu0 %v2194_v55, %s3568_s18 }
0x16a0   :  { %v2197_v31 = vpop.permute.xlu0 %2196 }
0x16a1   :  { %2946 = vmatmul.mubr.msk.f32.vlgmr.msra.gmra.mrb[20].mxu0 %vm38_vm0, %v2197_v31 }
0x16a2   :  { %3417 = vmatpush1.bf16.msra.mxu0 %v4844_v35  ;;  %2450 = vmatprep.mubr.f32.mxu0 %v4777_v32 }
0x16a3   :  { %3419 = vmatprep.subr.bf16.mxu0 %v4845_v38 }
0x16a4   :  { %v2380_v63 = vpop.permute.xlu0 %2379 }
0x16a6   :  { %3421 = vmatpush1.bf16.msra.mxu0 %v4846_v46 }
0x16a7   :  { %3423 = vmatprep.subr.bf16.mxu0 %v4847_v52 }
0x16aa   :  { %3425 = vmatpush1.bf16.msra.mxu0 %v4848_v54 }
0x16ab   :  { %3427 = vmatprep.subr.bf16.mxu0 %v4849_v62 }
0x16ae   :  { %3429 = vmatpush1.bf16.msra.mxu0 %v4850_v17 }
0x16af   :  { %3431 = vmatprep.subr.bf16.mxu0 %v4851_v24 }
0x16b2   :  { %3433 = vmatpush1.bf16.msra.mxu0 %v4852_v30 }
0x16b3   :  { %3435 = vmatprep.subr.bf16.mxu0 %v4853_v8 }
0x16b6   :  { %3437 = vmatpush1.bf16.msra.mxu0 %v4854_v26 }
0x1774   :  { %v2266_v32 = vpop.f32.mrb[20].mxu0 }
0x1775   :  { %v2273_v20 = vrot.slane %v2266_v32, %v3858_v33  ;;  %v2947_v1 = vpop.f32.mrb[21].mxu0 }
0x1777   :  { %v2344_v39 = vadd.f32 %v2343_v15, %v2273_v20 }
0x1779   :  { %v2347_v42 = vsel %vm450_vm4, %v2344_v39, -inf }
0x177a   :  { %v2348_v14 = vrot.slane %v2347_v42, 4 }
0x177c   :  { %v2349_v9 = vmax.f32 %v2347_v42, %v2348_v14 }
0x177e   :  { %v2350_v47 = vrot.slane %v2349_v9, 2 }
0x1780   :  { %v2351_v45 = vmax.f32 %v2349_v9, %v2350_v47 }
0x1782   :  { %v2352_v49 = vrot.slane %v2351_v45, 1 }
0x1784   :  { %v2353_v27 = vmax.f32 %v2351_v45, %v2352_v49 }
0x1786   :  { %v2354_v60 = vsub.f32 %v2344_v39, %v2353_v27 }
0x1788   :  { %v2355_v4 = vmul.f32 1.442695, %v2354_v60 }
0x178a   :  { %3529 = vpow2.f32 %v2355_v4 }
0x1794   :  { %v3530_v5 = vpop.eup %3529 }
0x1795   :  { %v2357_v36 = vsel %vm450_vm4, %v3530_v5, 0.0 }
0x1796   :  { %v2358_v19 = vrot.slane %v2357_v36, 4 }
0x1798   :  { %v2359_v50 = vadd.f32 %v2358_v19, %v2357_v36 }
0x179a   :  { %v2360_v41 = vrot.slane %v2359_v50, 2 }
0x179c   :  { %v2361_v33 = vadd.f32 %v2360_v41, %v2359_v50 }
0x179e   :  { %v2362_v37 = vrot.slane %v2361_v33, 1 }
0x17a0   :  { %v2363_v58 = vadd.f32 %v2362_v37, %v2361_v33 }
0x17a2   :  { %3531 = vrcp.f32 %v2363_v58 }
0x17ac   :  { %v3532_v51 = vpop.eup %3531 }
0x17ad   :  { %v2365_v21 = vmul.f32 %v3532_v51, %v3530_v5 }
0x17af   :  { %2368 = vperm.xlu1 %3473, %v2365_v21  }
0x182e   :  { %v2369_v7 = vpop.permute.xlu1 %2368 }
0x182f   :  { %v2371_v11 = vmul.f32 %v2369_v7, %v4569_v2 }
0x1831   :  { %v2372_v15 = vsel %vm376_vm3, %v2371_v11, 0.0 }
0x1832   :  { %v2373_v16 = vrot.slane %v2372_v15, 4 }
0x1834   :  { %v2374_v25 = vadd.f32 %v2373_v16, %v2372_v15 }
0x1836   :  { %v2375_v29 = vrot.slane %v2374_v25, 2 }
0x1838   :  { %v2376_v28 = vadd.f32 %v2375_v29, %v2374_v25 }
0x183a   :  { %v2377_v53 = vrot.slane %v2376_v28, 1 }
0x183c   :  { %v2378_v57 = vadd.f32 %v2377_v53, %v2376_v28 }
0x183e   :  { %v2382_v6 = vsel %vm376_vm3, %v2378_v57, %v2380_v63 }
0x183f   :  { %2686 = vmatmul.mubr.msk.f32.vlgmr.msra.gmra.mrb[22].mxu0 %vm40_vm1, %v2382_v6 }
0x1912   :  { %v2452_v23 = vpop.f32.mrb[22].mxu0 }
0x1913   :  { %v2453_v34 = vadd.f32 %v2452_v23, %v4189_v59  ;;  %v2454_v2 = vpop.f32.mrb[23].mxu0 }
0x1914   :  { %v2455_v31 = vadd.f32 %v2454_v2, %v4197_v10  ;;  %v3539_v10 = vld [vmem:[%s4658_s6] sm:$0x1] }
0x1915   :  { %v2528_v48 = vadd.f32 %v2524_v56, %v2453_v34 }
0x1917   :  { %v2688_v0 = vmul.f32 -1.442695, %v2528_v48 }
0x1919   :  { %3533 = vpow2.f32 %v2688_v0 }
0x1923   :  { %v3534_v61 = vpop.eup %3533 }
0x1924   :  { %v2532_v43 = vadd.f32 1.0, %v3534_v61 }
0x1926   :  { %3535 = vrcp.f32 %v2532_v43 }
0x1930   :  { %v3536_v55 = vpop.eup %3535 }
0x1931   :  { %v2535_v35 = vmul.f32 %v3536_v55, %v2526_v3  ;;  %v2538_v59 = vsub.f32 1.0, %v3536_v55  ;;  %v2544_v40 = vmul.f32 %v3536_v55, %v4526_v12 }
0x1933   :  { %v2536_v38 = vadd.f32 %v2535_v35, %v2455_v31 }
0x1935   :  { %3537 = vtanh.f32 %v2536_v38 }
0x193f   :  { %v3538_v46 = vpop.eup %3537 }
0x1940   :  { %2540 = vrot.lane.b32.xlu1 %v3538_v46, %s3564_s28 }
0x19b2   :  { %v2541_v22 = vpop.permute.xlu1 %2540 }
0x19b3   :  { %v2543_v52 = vmul.f32 %v2541_v22, %v2538_v59 }
0x19b5   :  { %v2545_v54 = vadd.f32 %v2544_v40, %v2543_v52 }
0x19b7   :  { %2547 = vrot.lane.b32.xlu0 %v2545_v54, %s3564_s28  ;;  %s3540_s28 = scalar_lea.vmem %s2643_s29, 64 }
0x19b8   :  { %p3541_p0 = scmp.ne.s32.totalorder %s2643_s29, %s3540_s28  ;;  %p3546_p2 = scmp.lt.s32.totalorder %s3540_s28, %s3540_s28 }
0x19ba   :  { %p3547_p3 = por %p3546_p2, %p3545_p1 }
0x19bc   :  { %p3548_p4 = pnand %p3547_p3, %p3541_p0 }
0x1a29   :  { %v2548_v62 = vpop.permute.xlu0 %2547 }
0x1a2a   :  { %2976 = vmatmul.mubr.msk.f32.vlgmr.msra.gmra.mrb[30].mxu1 %vm38_vm0, %v2548_v62 }
0x1afd   :  { %v2617_v18 = vpop.f32.mrb[30].mxu1 }
0x1afe   :  { %v2618_v44 = vadd.f32 %v3539_v10, %v2617_v18  ;;  %v2977_v17 = vpop.f32.mrb[31].mxu1 }
0x1b00   :  { %v2626_v24 = vrot.slane %v2618_v44, 5 }
0x1b02   :  { %v2633_v12 = vsel %vm2632_vm8, %v4556_v13, %v2626_v24 }
0x1b03   :  { %2635 = vst.msk [vmem:[#allocation2] sm:$0xf] %vm2634_vm9, %v2633_v12 }
0x1b04   :  { %3551 = shalt.err (!%p3548_p4)
}
0x1b05   :  { %s3552_s30 = scalar_lea.hbm %s4659_s7, 64 }
0x1b06   :  { %p3553_p5 = scmp.ne.s32.totalorder %s4659_s7, %s3552_s30  ;;  %p3556_p6 = scmp.lt.u32.totalorder %s3552_s30, %s4659_s7 }
0x1b08   :  { %p3558_p7 = pnand %p3556_p6, %p3553_p5 }
0x1b0a   :  { %3561 = shalt.err (!%p3558_p7)
}
0x1b0b   :  { %2645 = dma.vmem_to_hbm [thread:$0]  %s2643_s29, 64, %s4659_s7, [#allocation3]  }
0x1b0c   :  { %3562 = dma.done.wait [#allocation3], 64  }
0x1b0d   :  { %3563 = vsyncadd [#allocation3], 4294967232 }
0x1b0e   :  { %2649 = vsyncpa [#allocation3], 1 }

</bundles_post_ra>
